<compile_context>
chip_gen: v7x
topology: tpu7x:2x2x1
jax: 0.10.0
libtpu: 0.0.40
codegen_flags: <defaults>
</compile_context>

<pallas_src>
import numpy as np
import jax
import jax.numpy as jnp
from jax import lax
from jax.experimental import pallas as pl
from jax.experimental.pallas import tpu as pltpu


def _round_up(x, m):
    return (x + m - 1) // m * m


# ---------------------------------------------------------------------------
# Pallas kernel: the serial GRU recurrence over a chunk of T time steps.
# ---------------------------------------------------------------------------
def gru_recurrence_kernel(gi_ref, mask_ref, whh_ref, bhh_n_ref, out_ref, h_scratch):
    """One grid step == T GRU time steps (PyTorch gate order r, z, n).

    Grid = (batch_tiles [parallel], time_chunks [arbitrary, serial]).

    gi_ref   : (T, Bt, 3*Hp) bf16  precomputed x@W_ih^T + b_ih (+ b_hh for r,z gates)
    mask_ref : (T, Bt, 1)    f32   1.0 where step < length[b] else 0.0 (precomputed)
    whh_ref  : (Hp, 3*Hp)    bf16  resident W_hh^T (per-gate zero padded, lane-aligned)
    bhh_n_ref: (1, Hp)       f32   recurrent bias of the n gate (must stay inside r*(.))
    out_ref  : (T, Bt, Hp)   f32   masked hidden states (time-major, dense vreg stores)
    h_scratch: (Bt, Hp)      f32   recurrent state, persists across the time-chunk axis
    """
    c = pl.program_id(1)                                  # time-chunk index (serial axis)

    @pl.when(c == 0)
    def _():
        h_scratch[...] = jnp.zeros_like(h_scratch)        # h0 = zeros (fresh per batch tile)

    T = gi_ref.shape[0]
    Hp = whh_ref.shape[0]

    whh = whh_ref[...]                                    # (Hp, 3Hp) bf16, resident; load once
    bhh_n = bhh_n_ref[...]                                # (1, Hp) f32

    def step(t, h):
        gi = gi_ref[t].astype(jnp.float32)                # (Bt, 3Hp)
        # bf16 x bf16 -> f32 accumulate: single-pass MXU on all generations
        gh = jnp.dot(h.astype(jnp.bfloat16), whh,
                     preferred_element_type=jnp.float32)  # (Bt, 3Hp)

        # lane-aligned gate slices (Hp is a multiple of 128); gate math stays f32
        r = jax.nn.sigmoid(gi[:, :Hp] + gh[:, :Hp])
        z = jax.nn.sigmoid(gi[:, Hp:2 * Hp] + gh[:, Hp:2 * Hp])
        n = jnp.tanh(gi[:, 2 * Hp:] + r * (gh[:, 2 * Hp:] + bhh_n))
        h_new = (1.0 - z) * n + z * h                     # (Bt, Hp)

        # pack/pad semantics: mask precomputed in the wrapper, one multiply here
        out_ref[t] = (h_new * mask_ref[t]).astype(out_ref.dtype)
        return h_new

    h_scratch[...] = lax.fori_loop(0, T, step, h_scratch[...], unroll=True)


def gru_pallas(gi, mask, whh_t, bhh_n, *, b_tile, t_chunk, vmem_limit_bytes):
    Sp, Bp, G = gi.shape
    Hp = G // 3
    n_btiles = Bp // b_tile
    n_chunks = Sp // t_chunk
    return pl.pallas_call(
        gru_recurrence_kernel,
        out_shape=jax.ShapeDtypeStruct((Sp, Bp, Hp), jnp.float32),
        grid_spec=pltpu.PrefetchScalarGridSpec(
            num_scalar_prefetch=0,
            grid=(n_btiles, n_chunks),
            in_specs=[
                pl.BlockSpec((t_chunk, b_tile, G), lambda b, c: (c, b, 0)),   # gi stream (bf16)
                pl.BlockSpec((t_chunk, b_tile, 1), lambda b, c: (c, b, 0)),   # mask stream (tiny)
                pl.BlockSpec((Hp, G), lambda b, c: (0, 0)),                   # W_hh^T (resident)
                pl.BlockSpec((1, Hp), lambda b, c: (0, 0)),                   # b_hh n-gate (resident)
            ],
            out_specs=pl.BlockSpec((t_chunk, b_tile, Hp), lambda b, c: (c, b, 0)),
            scratch_shapes=[pltpu.VMEM((b_tile, Hp), jnp.float32)],           # recurrent state
        ),
        compiler_params=pltpu.CompilerParams(
            dimension_semantics=("parallel", "arbitrary"),   # batch tiles independent; time serial
            vmem_limit_bytes=vmem_limit_bytes),
    )(gi, mask, whh_t, bhh_n)


# ---------------------------------------------------------------------------
# RNNLayer.forward wrapper: embedding/concat glue, time-major hoisted input
# projection, gate-aligned zero padding, and the Pallas recurrence.
# ---------------------------------------------------------------------------
def rnn_layer_forward(t, in_mark, length, emb_table, W_ih, W_hh, b_ih, b_hh,
                      *, t_chunk=32):
    """RNNLayer.forward: (B,S) times + (B,S) marks -> (B, S, H) history encoding."""
    B, S = t.shape
    H = W_hh.shape[1]

    # layout padding: lane-dense hidden (multiple of 128), sublane-full batch (multiple of 8);
    # batch rows stay in the matmul M dim, tiled at 128 rows before splitting across the grid.
    Hp = max(128, _round_up(H, 128))
    Bp = _round_up(B, 8)
    b_tile = Bp if Bp <= 128 else 128
    Bp = _round_up(Bp, b_tile)

    # chunk sizing capped by a VMEM budget that fits v7x's 64 MiB physical VMEM
    step_stream_bytes = b_tile * (3 * Hp * 2 + Hp * 4 + 4)   # gi(bf16) + out(f32) + mask(f32)
    budget = 20 << 20                                        # double-buffered stream budget
    t_chunk = max(1, min(t_chunk, S, budget // (2 * step_stream_bytes)))
    Sp = _round_up(S, t_chunk)

    vmem_limit = int(min(max(
        2 * t_chunk * step_stream_bytes            # double-buffered gi/out/mask
        + 2 * Hp * 3 * Hp * 2                      # W_hh^T buffers (bf16)
        + b_tile * Hp * 4 + (4 << 20),             # h scratch + headroom
        16 << 20), 56 << 20))

    def pad_gates_mat(w):               # (3H, D) -> (3Hp, Dp) per-gate zero padding
        D = w.shape[1]
        Dp = Hp if D == H else D        # pad the hidden input dim of W_hh, keep F for W_ih
        w3 = w.reshape(3, H, D)
        out = jnp.zeros((3, Hp, Dp), w.dtype).at[:, :H, :D].set(w3)
        return out.reshape(3 * Hp, Dp)

    def pad_gates_vec(b):               # (3H,) -> (3, Hp)
        return jnp.zeros((3, Hp), b.dtype).at[:, :H].set(b.reshape(3, H))

    W_ih_p = pad_gates_mat(W_ih)                     # (3Hp, F)
    W_hh_p = pad_gates_mat(W_hh)                     # (3Hp, Hp)
    b_ih_p = pad_gates_vec(b_ih)                     # (3, Hp)
    b_hh_p = pad_gates_vec(b_hh)                     # (3, Hp)

    # fold b_ih (all gates) and b_hh (r,z gates) into the hoisted projection;
    # only the n-gate recurrent bias stays inside the recurrence.
    b_gi = b_ih_p.at[0].add(b_hh_p[0]).at[1].add(b_hh_p[1]).reshape(3 * Hp)
    b_hh_n = b_hh_p[2][None, :]                      # (1, Hp) f32

    # glue: mark embedding lookup + concat with the time feature (small (B,S,F) tensor)
    x = jnp.concatenate([t[..., None], emb_table[in_mark]], axis=-1).astype(jnp.float32)

    # transpose/pad the SMALL x tensor, then emit the projection directly time-major
    # (default matmul precision; the recurrence consumes gi in bf16 anyway)
    x_t = jnp.transpose(x, (1, 0, 2))                                          # (S, B, F)
    x_t = jnp.pad(x_t, ((0, Sp - S), (0, Bp - B), (0, 0)))                     # (Sp, Bp, F)
    gi = jnp.einsum('sbf,gf->sbg', x_t, W_ih_p) + b_gi                         # (Sp, Bp, 3Hp)
    gi = gi.astype(jnp.bfloat16)

    # full pack/pad mask, hoisted off the serial critical path (tiny, streamed per chunk)
    len_p = jnp.zeros((Bp,), jnp.int32).at[:B].set(length.astype(jnp.int32))
    mask = (jnp.arange(Sp, dtype=jnp.int32)[:, None]
            < len_p[None, :]).astype(jnp.float32)[..., None]                   # (Sp, Bp, 1)

    out = gru_pallas(gi, mask, W_hh_p.T.astype(jnp.bfloat16), b_hh_n,
                     b_tile=b_tile, t_chunk=t_chunk, vmem_limit_bytes=vmem_limit)

    # TODO(synk): consumers that can take time-major (S,B,H) output would avoid this
    # final slice+transpose (one extra HBM round trip over the output).
    return jnp.transpose(out[:S, :B, :H], (1, 0, 2))                           # (B, S, H)


# ---------------------------------------------------------------------------
# Pure-JAX reference (scan) with identical pack/pad masking semantics (f32).
# ---------------------------------------------------------------------------
def gru_reference(t, in_mark, length, emb_table, W_ih, W_hh, b_ih, b_hh):
    B, S = t.shape
    H = W_hh.shape[1]
    x = jnp.concatenate([t[..., None], emb_table[in_mark]], axis=-1)    # (B, S, F)

    def step(h, inp):
        x_t, m_t = inp
        gi = x_t @ W_ih.T + b_ih
        gh = h @ W_hh.T + b_hh
        i_r, i_z, i_n = jnp.split(gi, 3, axis=-1)
        h_r, h_z, h_n = jnp.split(gh, 3, axis=-1)
        r = jax.nn.sigmoid(i_r + h_r)
        z = jax.nn.sigmoid(i_z + h_z)
        n = jnp.tanh(i_n + r * h_n)
        h_new = (1.0 - z) * n + z * h
        return h_new, h_new * m_t[:, None]

    mask = (jnp.arange(S)[:, None] < length[None, :]).astype(jnp.float32)  # (S, B)
    _, ys = jax.lax.scan(step, jnp.zeros((B, H), jnp.float32),
                         (jnp.transpose(x, (1, 0, 2)), mask))
    return jnp.transpose(ys, (1, 0, 2))


if __name__ == "__main__":
    # config: history_size=32, rnn_type='GRU', use_history=True, use_marks=True,
    #         num_classes=5, mark_embedding_size=7  -> in_features = 8
    # TODO(synk): only rnn_type='GRU' / use_history=True path is implemented;
    #             LSTM and the using_history=False zero-return branch are not.
    B, S = 2, 8
    H = 32
    E = 7
    num_classes = 5
    F = E + 1

    key = jax.random.PRNGKey(0)
    k = jax.random.split(key, 8)
    bound = 1.0 / np.sqrt(H)   # PyTorch nn.GRU default init: U(-1/sqrt(H), 1/sqrt(H))
    W_ih = jax.random.uniform(k[0], (3 * H, F), minval=-bound, maxval=bound, dtype=jnp.float32)
    W_hh = jax.random.uniform(k[1], (3 * H, H), minval=-bound, maxval=bound, dtype=jnp.float32)
    b_ih = jax.random.uniform(k[2], (3 * H,), minval=-bound, maxval=bound, dtype=jnp.float32)
    b_hh = jax.random.uniform(k[3], (3 * H,), minval=-bound, maxval=bound, dtype=jnp.float32)
    emb_table = jax.random.normal(k[4], (num_classes, E), dtype=jnp.float32)  # nn.Embedding ~ N(0,1)

    t_in = jax.random.uniform(k[5], (B, S), dtype=jnp.float32)        # input.in_time
    in_mark = jax.random.randint(k[6], (B, S), 0, num_classes)        # input.in_mark
    length = jnp.array([8, 6], dtype=jnp.int32)                       # sorted desc (enforce_sorted)

    h = rnn_layer_forward(t_in, in_mark, length, emb_table, W_ih, W_hh, b_ih, b_hh)
    h = jax.block_until_ready(h)

    # pad_packed_sequence pads only up to max(length)
    max_len = int(jax.device_get(length).max())
    h = h[:, :max_len, :]

    h_ref = gru_reference(t_in, in_mark, length, emb_table, W_ih, W_hh, b_ih, b_hh)[:, :max_len, :]
    # bf16 streamed gi / W_hh in the kernel -> tolerance loosened from 1e-5 (f32 reference)
    np.testing.assert_allclose(np.asarray(h), np.asarray(h_ref), rtol=2e-2, atol=2e-2)
    assert not bool(jnp.isnan(h).any()), "NaN Values in embedding vector!"

    print("KERNEL_OK")
</pallas_src>

<mosaic_0001>
module attributes {stable_mosaic.version = 11 : i64} {
  func.func @gru_recurrence_kernel(%arg0: i32, %arg1: i32, %arg2: memref<8x8x384xbf16, #tpu.memory_space<vmem>>, %arg3: memref<8x8x1xf32, #tpu.memory_space<vmem>>, %arg4: memref<128x384xbf16, #tpu.memory_space<vmem>>, %arg5: memref<1x128xf32, #tpu.memory_space<vmem>>, %arg6: memref<8x8x128xf32, #tpu.memory_space<vmem>>, %arg7: memref<8x128xf32, #tpu.memory_space<vmem>>) attributes {dimension_semantics = [#tpu.dimension_semantics<parallel>, #tpu.dimension_semantics<arbitrary>], iteration_bounds = array<i64: 1, 1>, scalar_prefetch = 0 : i64, scratch_operands = 1 : i64, tpu.core_type = #tpu.core_type<tc>, window_params = [{transform_indices = @transform_0, window_bounds = array<i64: 8, 8, 384>}, {transform_indices = @transform_1, window_bounds = array<i64: 8, 8, 1>}, {pipeline_mode = #tpu.pipeline_mode<synchronous>, transform_indices = @transform_2, window_bounds = array<i64: 128, 384>}, {pipeline_mode = #tpu.pipeline_mode<synchronous>, transform_indices = @transform_3, window_bounds = array<i64: 1, 128>}, {transform_indices = @transform_4, window_bounds = array<i64: 8, 8, 128>}]} {
    %c0_i32 = arith.constant 0 : i32
    %0 = arith.cmpi eq, %arg1, %c0_i32 : i32
    %1 = arith.extui %0 : i1 to i32
    %c0_i32_0 = arith.constant 0 : i32
    %2 = arith.cmpi ne, %1, %c0_i32_0 : i32
    scf.if %2 {
      %cst_88 = arith.constant 0.000000e+00 : f32
      %351 = vector.broadcast %cst_88 : f32 to vector<8x128xf32>
      %c0_89 = arith.constant 0 : index
      %c0_90 = arith.constant 0 : index
      %352 = vector.load %arg7[%c0_89, %c0_90] : memref<8x128xf32, #tpu.memory_space<vmem>>, vector<8x128xf32>
      tpu.vector_store %arg7[%c0_89, %c0_90], %351 {strides = array<i32>} : memref<8x128xf32, #tpu.memory_space<vmem>>, vector<8x128xf32>,
    } else {
    }
    %c0 = arith.constant 0 : index
    %c0_1 = arith.constant 0 : index
    %3 = vector.load %arg4[%c0, %c0_1] : memref<128x384xbf16, #tpu.memory_space<vmem>>, vector<128x384xbf16>
    %c0_2 = arith.constant 0 : index
    %c0_3 = arith.constant 0 : index
    %4 = vector.load %arg5[%c0_2, %c0_3] : memref<1x128xf32, #tpu.memory_space<vmem>>, vector<1x128xf32>
    %c0_4 = arith.constant 0 : index
    %c0_5 = arith.constant 0 : index
    %5 = vector.load %arg7[%c0_4, %c0_5] : memref<8x128xf32, #tpu.memory_space<vmem>>, vector<8x128xf32>
    %c0_i32_6 = arith.constant 0 : i32
    %6 = arith.index_cast %c0_i32_6 : i32 to index
    %c0_7 = arith.constant 0 : index
    %c0_8 = arith.constant 0 : index
    %7 = vector.load %arg2[%6, %c0_7, %c0_8] : memref<8x8x384xbf16, #tpu.memory_space<vmem>>, vector<1x8x384xbf16>
    %8 = vector.shape_cast %7 : vector<1x8x384xbf16> to vector<8x384xbf16>
    %9 = arith.extf %8 : vector<8x384xbf16> to vector<8x384xf32>
    %10 = arith.truncf %5 : vector<8x128xf32> to vector<8x128xbf16>
    %cst = arith.constant dense<0.000000e+00> : vector<8x384xf32>
    %11 = tpu.matmul %10, %3, %cst {dimension_numbers = #tpu.dot_dimension_numbers<[1], [0], [0], [1], [0, 0, 1, 1], [], []>} : vector<8x128xbf16>, vector<128x384xbf16>, vector<8x384xf32> -> vector<8x384xf32>
    %12 = vector.extract_strided_slice %9 {offsets = [0, 0], sizes = [8, 128], strides = [1, 1]} : vector<8x384xf32> to vector<8x128xf32>
    %13 = vector.extract_strided_slice %11 {offsets = [0, 0], sizes = [8, 128], strides = [1, 1]} : vector<8x384xf32> to vector<8x128xf32>
    %14 = arith.addf %12, %13 : vector<8x128xf32>
    %15 = arith.negf %14 : vector<8x128xf32>
    %16 = math.exp %15 : vector<8x128xf32>
    %cst_9 = arith.constant 1.000000e+00 : f32
    %17 = vector.broadcast %cst_9 : f32 to vector<8x128xf32>
    %18 = arith.addf %17, %16 : vector<8x128xf32>
    %19 = arith.divf %17, %18 : vector<8x128xf32>
    %20 = vector.extract_strided_slice %9 {offsets = [0, 128], sizes = [8, 128], strides = [1, 1]} : vector<8x384xf32> to vector<8x128xf32>
    %21 = vector.extract_strided_slice %11 {offsets = [0, 128], sizes = [8, 128], strides = [1, 1]} : vector<8x384xf32> to vector<8x128xf32>
    %22 = arith.addf %20, %21 : vector<8x128xf32>
    %23 = arith.negf %22 : vector<8x128xf32>
    %24 = math.exp %23 : vector<8x128xf32>
    %cst_10 = arith.constant 1.000000e+00 : f32
    %25 = vector.broadcast %cst_10 : f32 to vector<8x128xf32>
    %26 = arith.addf %25, %24 : vector<8x128xf32>
    %27 = arith.divf %25, %26 : vector<8x128xf32>
    %28 = vector.extract_strided_slice %9 {offsets = [0, 256], sizes = [8, 128], strides = [1, 1]} : vector<8x384xf32> to vector<8x128xf32>
    %29 = vector.extract_strided_slice %11 {offsets = [0, 256], sizes = [8, 128], strides = [1, 1]} : vector<8x384xf32> to vector<8x128xf32>
    %30 = vector.broadcast %4 : vector<1x128xf32> to vector<8x128xf32>
    %31 = arith.addf %29, %30 : vector<8x128xf32>
    %32 = arith.mulf %19, %31 : vector<8x128xf32>
    %33 = arith.addf %28, %32 : vector<8x128xf32>
    %34 = math.tanh %33 : vector<8x128xf32>
    %cst_11 = arith.constant 1.000000e+00 : f32
    %35 = vector.broadcast %cst_11 : f32 to vector<8x128xf32>
    %36 = arith.subf %35, %27 : vector<8x128xf32>
    %37 = arith.mulf %36, %34 : vector<8x128xf32>
    %38 = arith.mulf %27, %5 : vector<8x128xf32>
    %39 = arith.addf %37, %38 : vector<8x128xf32>
    %40 = arith.index_cast %c0_i32_6 : i32 to index
    %c0_12 = arith.constant 0 : index
    %c0_13 = arith.constant 0 : index
    %41 = vector.load %arg3[%40, %c0_12, %c0_13] : memref<8x8x1xf32, #tpu.memory_space<vmem>>, vector<1x8x1xf32>
    %42 = vector.shape_cast %41 : vector<1x8x1xf32> to vector<8x1xf32>
    %43 = vector.broadcast %42 : vector<8x1xf32> to vector<8x128xf32>
    %44 = arith.mulf %39, %43 : vector<8x128xf32>
    %45 = arith.index_cast %c0_i32_6 : i32 to index
    %c0_14 = arith.constant 0 : index
    %c0_15 = arith.constant 0 : index
    %46 = vector.load %arg6[%45, %c0_14, %c0_15] : memref<8x8x128xf32, #tpu.memory_space<vmem>>, vector<1x8x128xf32>
    %47 = vector.shape_cast %46 : vector<1x8x128xf32> to vector<8x128xf32>
    %48 = vector.shape_cast %44 : vector<8x128xf32> to vector<1x8x128xf32>
    tpu.vector_store %arg6[%45, %c0_14, %c0_15], %48 {strides = array<i32>} : memref<8x8x128xf32, #tpu.memory_space<vmem>>, vector<1x8x128xf32>,
    %c1_i32 = arith.constant 1 : i32
    %49 = arith.index_cast %c1_i32 : i32 to index
    %c0_16 = arith.constant 0 : index
    %c0_17 = arith.constant 0 : index
    %50 = vector.load %arg2[%49, %c0_16, %c0_17] : memref<8x8x384xbf16, #tpu.memory_space<vmem>>, vector<1x8x384xbf16>
    %51 = vector.shape_cast %50 : vector<1x8x384xbf16> to vector<8x384xbf16>
    %52 = arith.extf %51 : vector<8x384xbf16> to vector<8x384xf32>
    %53 = arith.truncf %39 : vector<8x128xf32> to vector<8x128xbf16>
    %cst_18 = arith.constant dense<0.000000e+00> : vector<8x384xf32>
    %54 = tpu.matmul %53, %3, %cst_18 {dimension_numbers = #tpu.dot_dimension_numbers<[1], [0], [0], [1], [0, 0, 1, 1], [], []>} : vector<8x128xbf16>, vector<128x384xbf16>, vector<8x384xf32> -> vector<8x384xf32>
    %55 = vector.extract_strided_slice %52 {offsets = [0, 0], sizes = [8, 128], strides = [1, 1]} : vector<8x384xf32> to vector<8x128xf32>
    %56 = vector.extract_strided_slice %54 {offsets = [0, 0], sizes = [8, 128], strides = [1, 1]} : vector<8x384xf32> to vector<8x128xf32>
    %57 = arith.addf %55, %56 : vector<8x128xf32>
    %58 = arith.negf %57 : vector<8x128xf32>
    %59 = math.exp %58 : vector<8x128xf32>
    %cst_19 = arith.constant 1.000000e+00 : f32
    %60 = vector.broadcast %cst_19 : f32 to vector<8x128xf32>
    %61 = arith.addf %60, %59 : vector<8x128xf32>
    %62 = arith.divf %60, %61 : vector<8x128xf32>
    %63 = vector.extract_strided_slice %52 {offsets = [0, 128], sizes = [8, 128], strides = [1, 1]} : vector<8x384xf32> to vector<8x128xf32>
    %64 = vector.extract_strided_slice %54 {offsets = [0, 128], sizes = [8, 128], strides = [1, 1]} : vector<8x384xf32> to vector<8x128xf32>
    %65 = arith.addf %63, %64 : vector<8x128xf32>
    %66 = arith.negf %65 : vector<8x128xf32>
    %67 = math.exp %66 : vector<8x128xf32>
    %cst_20 = arith.constant 1.000000e+00 : f32
    %68 = vector.broadcast %cst_20 : f32 to vector<8x128xf32>
    %69 = arith.addf %68, %67 : vector<8x128xf32>
    %70 = arith.divf %68, %69 : vector<8x128xf32>
    %71 = vector.extract_strided_slice %52 {offsets = [0, 256], sizes = [8, 128], strides = [1, 1]} : vector<8x384xf32> to vector<8x128xf32>
    %72 = vector.extract_strided_slice %54 {offsets = [0, 256], sizes = [8, 128], strides = [1, 1]} : vector<8x384xf32> to vector<8x128xf32>
    %73 = vector.broadcast %4 : vector<1x128xf32> to vector<8x128xf32>
    %74 = arith.addf %72, %73 : vector<8x128xf32>
    %75 = arith.mulf %62, %74 : vector<8x128xf32>
    %76 = arith.addf %71, %75 : vector<8x128xf32>
    %77 = math.tanh %76 : vector<8x128xf32>
    %cst_21 = arith.constant 1.000000e+00 : f32
    %78 = vector.broadcast %cst_21 : f32 to vector<8x128xf32>
    %79 = arith.subf %78, %70 : vector<8x128xf32>
    %80 = arith.mulf %79, %77 : vector<8x128xf32>
    %81 = arith.mulf %70, %39 : vector<8x128xf32>
    %82 = arith.addf %80, %81 : vector<8x128xf32>
    %83 = arith.index_cast %c1_i32 : i32 to index
    %c0_22 = arith.constant 0 : index
    %c0_23 = arith.constant 0 : index
    %84 = vector.load %arg3[%83, %c0_22, %c0_23] : memref<8x8x1xf32, #tpu.memory_space<vmem>>, vector<1x8x1xf32>
    %85 = vector.shape_cast %84 : vector<1x8x1xf32> to vector<8x1xf32>
    %86 = vector.broadcast %85 : vector<8x1xf32> to vector<8x128xf32>
    %87 = arith.mulf %82, %86 : vector<8x128xf32>
    %88 = arith.index_cast %c1_i32 : i32 to index
    %c0_24 = arith.constant 0 : index
    %c0_25 = arith.constant 0 : index
    %89 = vector.load %arg6[%88, %c0_24, %c0_25] : memref<8x8x128xf32, #tpu.memory_space<vmem>>, vector<1x8x128xf32>
    %90 = vector.shape_cast %89 : vector<1x8x128xf32> to vector<8x128xf32>
    %91 = vector.shape_cast %87 : vector<8x128xf32> to vector<1x8x128xf32>
    tpu.vector_store %arg6[%88, %c0_24, %c0_25], %91 {strides = array<i32>} : memref<8x8x128xf32, #tpu.memory_space<vmem>>, vector<1x8x128xf32>,
    %c2_i32 = arith.constant 2 : i32
    %92 = arith.index_cast %c2_i32 : i32 to index
    %c0_26 = arith.constant 0 : index
    %c0_27 = arith.constant 0 : index
    %93 = vector.load %arg2[%92, %c0_26, %c0_27] : memref<8x8x384xbf16, #tpu.memory_space<vmem>>, vector<1x8x384xbf16>
    %94 = vector.shape_cast %93 : vector<1x8x384xbf16> to vector<8x384xbf16>
    %95 = arith.extf %94 : vector<8x384xbf16> to vector<8x384xf32>
    %96 = arith.truncf %82 : vector<8x128xf32> to vector<8x128xbf16>
    %cst_28 = arith.constant dense<0.000000e+00> : vector<8x384xf32>
    %97 = tpu.matmul %96, %3, %cst_28 {dimension_numbers = #tpu.dot_dimension_numbers<[1], [0], [0], [1], [0, 0, 1, 1], [], []>} : vector<8x128xbf16>, vector<128x384xbf16>, vector<8x384xf32> -> vector<8x384xf32>
    %98 = vector.extract_strided_slice %95 {offsets = [0, 0], sizes = [8, 128], strides = [1, 1]} : vector<8x384xf32> to vector<8x128xf32>
    %99 = vector.extract_strided_slice %97 {offsets = [0, 0], sizes = [8, 128], strides = [1, 1]} : vector<8x384xf32> to vector<8x128xf32>
    %100 = arith.addf %98, %99 : vector<8x128xf32>
    %101 = arith.negf %100 : vector<8x128xf32>
    %102 = math.exp %101 : vector<8x128xf32>
    %cst_29 = arith.constant 1.000000e+00 : f32
    %103 = vector.broadcast %cst_29 : f32 to vector<8x128xf32>
    %104 = arith.addf %103, %102 : vector<8x128xf32>
    %105 = arith.divf %103, %104 : vector<8x128xf32>
    %106 = vector.extract_strided_slice %95 {offsets = [0, 128], sizes = [8, 128], strides = [1, 1]} : vector<8x384xf32> to vector<8x128xf32>
    %107 = vector.extract_strided_slice %97 {offsets = [0, 128], sizes = [8, 128], strides = [1, 1]} : vector<8x384xf32> to vector<8x128xf32>
    %108 = arith.addf %106, %107 : vector<8x128xf32>
    %109 = arith.negf %108 : vector<8x128xf32>
    %110 = math.exp %109 : vector<8x128xf32>
    %cst_30 = arith.constant 1.000000e+00 : f32
    %111 = vector.broadcast %cst_30 : f32 to vector<8x128xf32>
    %112 = arith.addf %111, %110 : vector<8x128xf32>
    %113 = arith.divf %111, %112 : vector<8x128xf32>
    %114 = vector.extract_strided_slice %95 {offsets = [0, 256], sizes = [8, 128], strides = [1, 1]} : vector<8x384xf32> to vector<8x128xf32>
    %115 = vector.extract_strided_slice %97 {offsets = [0, 256], sizes = [8, 128], strides = [1, 1]} : vector<8x384xf32> to vector<8x128xf32>
    %116 = vector.broadcast %4 : vector<1x128xf32> to vector<8x128xf32>
    %117 = arith.addf %115, %116 : vector<8x128xf32>
    %118 = arith.mulf %105, %117 : vector<8x128xf32>
    %119 = arith.addf %114, %118 : vector<8x128xf32>
    %120 = math.tanh %119 : vector<8x128xf32>
    %cst_31 = arith.constant 1.000000e+00 : f32
    %121 = vector.broadcast %cst_31 : f32 to vector<8x128xf32>
    %122 = arith.subf %121, %113 : vector<8x128xf32>
    %123 = arith.mulf %122, %120 : vector<8x128xf32>
    %124 = arith.mulf %113, %82 : vector<8x128xf32>
    %125 = arith.addf %123, %124 : vector<8x128xf32>
    %126 = arith.index_cast %c2_i32 : i32 to index
    %c0_32 = arith.constant 0 : index
    %c0_33 = arith.constant 0 : index
    %127 = vector.load %arg3[%126, %c0_32, %c0_33] : memref<8x8x1xf32, #tpu.memory_space<vmem>>, vector<1x8x1xf32>
    %128 = vector.shape_cast %127 : vector<1x8x1xf32> to vector<8x1xf32>
    %129 = vector.broadcast %128 : vector<8x1xf32> to vector<8x128xf32>
    %130 = arith.mulf %125, %129 : vector<8x128xf32>
    %131 = arith.index_cast %c2_i32 : i32 to index
    %c0_34 = arith.constant 0 : index
    %c0_35 = arith.constant 0 : index
    %132 = vector.load %arg6[%131, %c0_34, %c0_35] : memref<8x8x128xf32, #tpu.memory_space<vmem>>, vector<1x8x128xf32>
    %133 = vector.shape_cast %132 : vector<1x8x128xf32> to vector<8x128xf32>
    %134 = vector.shape_cast %130 : vector<8x128xf32> to vector<1x8x128xf32>
    tpu.vector_store %arg6[%131, %c0_34, %c0_35], %134 {strides = array<i32>} : memref<8x8x128xf32, #tpu.memory_space<vmem>>, vector<1x8x128xf32>,
    %c3_i32 = arith.constant 3 : i32
    %135 = arith.index_cast %c3_i32 : i32 to index
    %c0_36 = arith.constant 0 : index
    %c0_37 = arith.constant 0 : index
    %136 = vector.load %arg2[%135, %c0_36, %c0_37] : memref<8x8x384xbf16, #tpu.memory_space<vmem>>, vector<1x8x384xbf16>
    %137 = vector.shape_cast %136 : vector<1x8x384xbf16> to vector<8x384xbf16>
    %138 = arith.extf %137 : vector<8x384xbf16> to vector<8x384xf32>
    %139 = arith.truncf %125 : vector<8x128xf32> to vector<8x128xbf16>
    %cst_38 = arith.constant dense<0.000000e+00> : vector<8x384xf32>
    %140 = tpu.matmul %139, %3, %cst_38 {dimension_numbers = #tpu.dot_dimension_numbers<[1], [0], [0], [1], [0, 0, 1, 1], [], []>} : vector<8x128xbf16>, vector<128x384xbf16>, vector<8x384xf32> -> vector<8x384xf32>
    %141 = vector.extract_strided_slice %138 {offsets = [0, 0], sizes = [8, 128], strides = [1, 1]} : vector<8x384xf32> to vector<8x128xf32>
    %142 = vector.extract_strided_slice %140 {offsets = [0, 0], sizes = [8, 128], strides = [1, 1]} : vector<8x384xf32> to vector<8x128xf32>
    %143 = arith.addf %141, %142 : vector<8x128xf32>
    %144 = arith.negf %143 : vector<8x128xf32>
    %145 = math.exp %144 : vector<8x128xf32>
    %cst_39 = arith.constant 1.000000e+00 : f32
    %146 = vector.broadcast %cst_39 : f32 to vector<8x128xf32>
    %147 = arith.addf %146, %145 : vector<8x128xf32>
    %148 = arith.divf %146, %147 : vector<8x128xf32>
    %149 = vector.extract_strided_slice %138 {offsets = [0, 128], sizes = [8, 128], strides = [1, 1]} : vector<8x384xf32> to vector<8x128xf32>
    %150 = vector.extract_strided_slice %140 {offsets = [0, 128], sizes = [8, 128], strides = [1, 1]} : vector<8x384xf32> to vector<8x128xf32>
    %151 = arith.addf %149, %150 : vector<8x128xf32>
    %152 = arith.negf %151 : vector<8x128xf32>
    %153 = math.exp %152 : vector<8x128xf32>
    %cst_40 = arith.constant 1.000000e+00 : f32
    %154 = vector.broadcast %cst_40 : f32 to vector<8x128xf32>
    %155 = arith.addf %154, %153 : vector<8x128xf32>
    %156 = arith.divf %154, %155 : vector<8x128xf32>
    %157 = vector.extract_strided_slice %138 {offsets = [0, 256], sizes = [8, 128], strides = [1, 1]} : vector<8x384xf32> to vector<8x128xf32>
    %158 = vector.extract_strided_slice %140 {offsets = [0, 256], sizes = [8, 128], strides = [1, 1]} : vector<8x384xf32> to vector<8x128xf32>
    %159 = vector.broadcast %4 : vector<1x128xf32> to vector<8x128xf32>
    %160 = arith.addf %158, %159 : vector<8x128xf32>
    %161 = arith.mulf %148, %160 : vector<8x128xf32>
    %162 = arith.addf %157, %161 : vector<8x128xf32>
    %163 = math.tanh %162 : vector<8x128xf32>
    %cst_41 = arith.constant 1.000000e+00 : f32
    %164 = vector.broadcast %cst_41 : f32 to vector<8x128xf32>
    %165 = arith.subf %164, %156 : vector<8x128xf32>
    %166 = arith.mulf %165, %163 : vector<8x128xf32>
    %167 = arith.mulf %156, %125 : vector<8x128xf32>
    %168 = arith.addf %166, %167 : vector<8x128xf32>
    %169 = arith.index_cast %c3_i32 : i32 to index
    %c0_42 = arith.constant 0 : index
    %c0_43 = arith.constant 0 : index
    %170 = vector.load %arg3[%169, %c0_42, %c0_43] : memref<8x8x1xf32, #tpu.memory_space<vmem>>, vector<1x8x1xf32>
    %171 = vector.shape_cast %170 : vector<1x8x1xf32> to vector<8x1xf32>
    %172 = vector.broadcast %171 : vector<8x1xf32> to vector<8x128xf32>
    %173 = arith.mulf %168, %172 : vector<8x128xf32>
    %174 = arith.index_cast %c3_i32 : i32 to index
    %c0_44 = arith.constant 0 : index
    %c0_45 = arith.constant 0 : index
    %175 = vector.load %arg6[%174, %c0_44, %c0_45] : memref<8x8x128xf32, #tpu.memory_space<vmem>>, vector<1x8x128xf32>
    %176 = vector.shape_cast %175 : vector<1x8x128xf32> to vector<8x128xf32>
    %177 = vector.shape_cast %173 : vector<8x128xf32> to vector<1x8x128xf32>
    tpu.vector_store %arg6[%174, %c0_44, %c0_45], %177 {strides = array<i32>} : memref<8x8x128xf32, #tpu.memory_space<vmem>>, vector<1x8x128xf32>,
    %c4_i32 = arith.constant 4 : i32
    %178 = arith.index_cast %c4_i32 : i32 to index
    %c0_46 = arith.constant 0 : index
    %c0_47 = arith.constant 0 : index
    %179 = vector.load %arg2[%178, %c0_46, %c0_47] : memref<8x8x384xbf16, #tpu.memory_space<vmem>>, vector<1x8x384xbf16>
    %180 = vector.shape_cast %179 : vector<1x8x384xbf16> to vector<8x384xbf16>
    %181 = arith.extf %180 : vector<8x384xbf16> to vector<8x384xf32>
    %182 = arith.truncf %168 : vector<8x128xf32> to vector<8x128xbf16>
    %cst_48 = arith.constant dense<0.000000e+00> : vector<8x384xf32>
    %183 = tpu.matmul %182, %3, %cst_48 {dimension_numbers = #tpu.dot_dimension_numbers<[1], [0], [0], [1], [0, 0, 1, 1], [], []>} : vector<8x128xbf16>, vector<128x384xbf16>, vector<8x384xf32> -> vector<8x384xf32>
    %184 = vector.extract_strided_slice %181 {offsets = [0, 0], sizes = [8, 128], strides = [1, 1]} : vector<8x384xf32> to vector<8x128xf32>
    %185 = vector.extract_strided_slice %183 {offsets = [0, 0], sizes = [8, 128], strides = [1, 1]} : vector<8x384xf32> to vector<8x128xf32>
    %186 = arith.addf %184, %185 : vector<8x128xf32>
    %187 = arith.negf %186 : vector<8x128xf32>
    %188 = math.exp %187 : vector<8x128xf32>
    %cst_49 = arith.constant 1.000000e+00 : f32
    %189 = vector.broadcast %cst_49 : f32 to vector<8x128xf32>
    %190 = arith.addf %189, %188 : vector<8x128xf32>
    %191 = arith.divf %189, %190 : vector<8x128xf32>
    %192 = vector.extract_strided_slice %181 {offsets = [0, 128], sizes = [8, 128], strides = [1, 1]} : vector<8x384xf32> to vector<8x128xf32>
    %193 = vector.extract_strided_slice %183 {offsets = [0, 128], sizes = [8, 128], strides = [1, 1]} : vector<8x384xf32> to vector<8x128xf32>
    %194 = arith.addf %192, %193 : vector<8x128xf32>
    %195 = arith.negf %194 : vector<8x128xf32>
    %196 = math.exp %195 : vector<8x128xf32>
    %cst_50 = arith.constant 1.000000e+00 : f32
    %197 = vector.broadcast %cst_50 : f32 to vector<8x128xf32>
    %198 = arith.addf %197, %196 : vector<8x128xf32>
    %199 = arith.divf %197, %198 : vector<8x128xf32>
    %200 = vector.extract_strided_slice %181 {offsets = [0, 256], sizes = [8, 128], strides = [1, 1]} : vector<8x384xf32> to vector<8x128xf32>
    %201 = vector.extract_strided_slice %183 {offsets = [0, 256], sizes = [8, 128], strides = [1, 1]} : vector<8x384xf32> to vector<8x128xf32>
    %202 = vector.broadcast %4 : vector<1x128xf32> to vector<8x128xf32>
    %203 = arith.addf %201, %202 : vector<8x128xf32>
    %204 = arith.mulf %191, %203 : vector<8x128xf32>
    %205 = arith.addf %200, %204 : vector<8x128xf32>
    %206 = math.tanh %205 : vector<8x128xf32>
    %cst_51 = arith.constant 1.000000e+00 : f32
    %207 = vector.broadcast %cst_51 : f32 to vector<8x128xf32>
    %208 = arith.subf %207, %199 : vector<8x128xf32>
    %209 = arith.mulf %208, %206 : vector<8x128xf32>
    %210 = arith.mulf %199, %168 : vector<8x128xf32>
    %211 = arith.addf %209, %210 : vector<8x128xf32>
    %212 = arith.index_cast %c4_i32 : i32 to index
    %c0_52 = arith.constant 0 : index
    %c0_53 = arith.constant 0 : index
    %213 = vector.load %arg3[%212, %c0_52, %c0_53] : memref<8x8x1xf32, #tpu.memory_space<vmem>>, vector<1x8x1xf32>
    %214 = vector.shape_cast %213 : vector<1x8x1xf32> to vector<8x1xf32>
    %215 = vector.broadcast %214 : vector<8x1xf32> to vector<8x128xf32>
    %216 = arith.mulf %211, %215 : vector<8x128xf32>
    %217 = arith.index_cast %c4_i32 : i32 to index
    %c0_54 = arith.constant 0 : index
    %c0_55 = arith.constant 0 : index
    %218 = vector.load %arg6[%217, %c0_54, %c0_55] : memref<8x8x128xf32, #tpu.memory_space<vmem>>, vector<1x8x128xf32>
    %219 = vector.shape_cast %218 : vector<1x8x128xf32> to vector<8x128xf32>
    %220 = vector.shape_cast %216 : vector<8x128xf32> to vector<1x8x128xf32>
    tpu.vector_store %arg6[%217, %c0_54, %c0_55], %220 {strides = array<i32>} : memref<8x8x128xf32, #tpu.memory_space<vmem>>, vector<1x8x128xf32>,
    %c5_i32 = arith.constant 5 : i32
    %221 = arith.index_cast %c5_i32 : i32 to index
    %c0_56 = arith.constant 0 : index
    %c0_57 = arith.constant 0 : index
    %222 = vector.load %arg2[%221, %c0_56, %c0_57] : memref<8x8x384xbf16, #tpu.memory_space<vmem>>, vector<1x8x384xbf16>
    %223 = vector.shape_cast %222 : vector<1x8x384xbf16> to vector<8x384xbf16>
    %224 = arith.extf %223 : vector<8x384xbf16> to vector<8x384xf32>
    %225 = arith.truncf %211 : vector<8x128xf32> to vector<8x128xbf16>
    %cst_58 = arith.constant dense<0.000000e+00> : vector<8x384xf32>
    %226 = tpu.matmul %225, %3, %cst_58 {dimension_numbers = #tpu.dot_dimension_numbers<[1], [0], [0], [1], [0, 0, 1, 1], [], []>} : vector<8x128xbf16>, vector<128x384xbf16>, vector<8x384xf32> -> vector<8x384xf32>
    %227 = vector.extract_strided_slice %224 {offsets = [0, 0], sizes = [8, 128], strides = [1, 1]} : vector<8x384xf32> to vector<8x128xf32>
    %228 = vector.extract_strided_slice %226 {offsets = [0, 0], sizes = [8, 128], strides = [1, 1]} : vector<8x384xf32> to vector<8x128xf32>
    %229 = arith.addf %227, %228 : vector<8x128xf32>
    %230 = arith.negf %229 : vector<8x128xf32>
    %231 = math.exp %230 : vector<8x128xf32>
    %cst_59 = arith.constant 1.000000e+00 : f32
    %232 = vector.broadcast %cst_59 : f32 to vector<8x128xf32>
    %233 = arith.addf %232, %231 : vector<8x128xf32>
    %234 = arith.divf %232, %233 : vector<8x128xf32>
    %235 = vector.extract_strided_slice %224 {offsets = [0, 128], sizes = [8, 128], strides = [1, 1]} : vector<8x384xf32> to vector<8x128xf32>
    %236 = vector.extract_strided_slice %226 {offsets = [0, 128], sizes = [8, 128], strides = [1, 1]} : vector<8x384xf32> to vector<8x128xf32>
    %237 = arith.addf %235, %236 : vector<8x128xf32>
    %238 = arith.negf %237 : vector<8x128xf32>
    %239 = math.exp %238 : vector<8x128xf32>
    %cst_60 = arith.constant 1.000000e+00 : f32
    %240 = vector.broadcast %cst_60 : f32 to vector<8x128xf32>
    %241 = arith.addf %240, %239 : vector<8x128xf32>
    %242 = arith.divf %240, %241 : vector<8x128xf32>
    %243 = vector.extract_strided_slice %224 {offsets = [0, 256], sizes = [8, 128], strides = [1, 1]} : vector<8x384xf32> to vector<8x128xf32>
    %244 = vector.extract_strided_slice %226 {offsets = [0, 256], sizes = [8, 128], strides = [1, 1]} : vector<8x384xf32> to vector<8x128xf32>
    %245 = vector.broadcast %4 : vector<1x128xf32> to vector<8x128xf32>
    %246 = arith.addf %244, %245 : vector<8x128xf32>
    %247 = arith.mulf %234, %246 : vector<8x128xf32>
    %248 = arith.addf %243, %247 : vector<8x128xf32>
    %249 = math.tanh %248 : vector<8x128xf32>
    %cst_61 = arith.constant 1.000000e+00 : f32
    %250 = vector.broadcast %cst_61 : f32 to vector<8x128xf32>
    %251 = arith.subf %250, %242 : vector<8x128xf32>
    %252 = arith.mulf %251, %249 : vector<8x128xf32>
    %253 = arith.mulf %242, %211 : vector<8x128xf32>
    %254 = arith.addf %252, %253 : vector<8x128xf32>
    %255 = arith.index_cast %c5_i32 : i32 to index
    %c0_62 = arith.constant 0 : index
    %c0_63 = arith.constant 0 : index
    %256 = vector.load %arg3[%255, %c0_62, %c0_63] : memref<8x8x1xf32, #tpu.memory_space<vmem>>, vector<1x8x1xf32>
    %257 = vector.shape_cast %256 : vector<1x8x1xf32> to vector<8x1xf32>
    %258 = vector.broadcast %257 : vector<8x1xf32> to vector<8x128xf32>
    %259 = arith.mulf %254, %258 : vector<8x128xf32>
    %260 = arith.index_cast %c5_i32 : i32 to index
    %c0_64 = arith.constant 0 : index
    %c0_65 = arith.constant 0 : index
    %261 = vector.load %arg6[%260, %c0_64, %c0_65] : memref<8x8x128xf32, #tpu.memory_space<vmem>>, vector<1x8x128xf32>
    %262 = vector.shape_cast %261 : vector<1x8x128xf32> to vector<8x128xf32>
    %263 = vector.shape_cast %259 : vector<8x128xf32> to vector<1x8x128xf32>
    tpu.vector_store %arg6[%260, %c0_64, %c0_65], %263 {strides = array<i32>} : memref<8x8x128xf32, #tpu.memory_space<vmem>>, vector<1x8x128xf32>,
    %c6_i32 = arith.constant 6 : i32
    %264 = arith.index_cast %c6_i32 : i32 to index
    %c0_66 = arith.constant 0 : index
    %c0_67 = arith.constant 0 : index
    %265 = vector.load %arg2[%264, %c0_66, %c0_67] : memref<8x8x384xbf16, #tpu.memory_space<vmem>>, vector<1x8x384xbf16>
    %266 = vector.shape_cast %265 : vector<1x8x384xbf16> to vector<8x384xbf16>
    %267 = arith.extf %266 : vector<8x384xbf16> to vector<8x384xf32>
    %268 = arith.truncf %254 : vector<8x128xf32> to vector<8x128xbf16>
    %cst_68 = arith.constant dense<0.000000e+00> : vector<8x384xf32>
    %269 = tpu.matmul %268, %3, %cst_68 {dimension_numbers = #tpu.dot_dimension_numbers<[1], [0], [0], [1], [0, 0, 1, 1], [], []>} : vector<8x128xbf16>, vector<128x384xbf16>, vector<8x384xf32> -> vector<8x384xf32>
    %270 = vector.extract_strided_slice %267 {offsets = [0, 0], sizes = [8, 128], strides = [1, 1]} : vector<8x384xf32> to vector<8x128xf32>
    %271 = vector.extract_strided_slice %269 {offsets = [0, 0], sizes = [8, 128], strides = [1, 1]} : vector<8x384xf32> to vector<8x128xf32>
    %272 = arith.addf %270, %271 : vector<8x128xf32>
    %273 = arith.negf %272 : vector<8x128xf32>
    %274 = math.exp %273 : vector<8x128xf32>
    %cst_69 = arith.constant 1.000000e+00 : f32
    %275 = vector.broadcast %cst_69 : f32 to vector<8x128xf32>
    %276 = arith.addf %275, %274 : vector<8x128xf32>
    %277 = arith.divf %275, %276 : vector<8x128xf32>
    %278 = vector.extract_strided_slice %267 {offsets = [0, 128], sizes = [8, 128], strides = [1, 1]} : vector<8x384xf32> to vector<8x128xf32>
    %279 = vector.extract_strided_slice %269 {offsets = [0, 128], sizes = [8, 128], strides = [1, 1]} : vector<8x384xf32> to vector<8x128xf32>
    %280 = arith.addf %278, %279 : vector<8x128xf32>
    %281 = arith.negf %280 : vector<8x128xf32>
    %282 = math.exp %281 : vector<8x128xf32>
    %cst_70 = arith.constant 1.000000e+00 : f32
    %283 = vector.broadcast %cst_70 : f32 to vector<8x128xf32>
    %284 = arith.addf %283, %282 : vector<8x128xf32>
    %285 = arith.divf %283, %284 : vector<8x128xf32>
    %286 = vector.extract_strided_slice %267 {offsets = [0, 256], sizes = [8, 128], strides = [1, 1]} : vector<8x384xf32> to vector<8x128xf32>
    %287 = vector.extract_strided_slice %269 {offsets = [0, 256], sizes = [8, 128], strides = [1, 1]} : vector<8x384xf32> to vector<8x128xf32>
    %288 = vector.broadcast %4 : vector<1x128xf32> to vector<8x128xf32>
    %289 = arith.addf %287, %288 : vector<8x128xf32>
    %290 = arith.mulf %277, %289 : vector<8x128xf32>
    %291 = arith.addf %286, %290 : vector<8x128xf32>
    %292 = math.tanh %291 : vector<8x128xf32>
    %cst_71 = arith.constant 1.000000e+00 : f32
    %293 = vector.broadcast %cst_71 : f32 to vector<8x128xf32>
    %294 = arith.subf %293, %285 : vector<8x128xf32>
    %295 = arith.mulf %294, %292 : vector<8x128xf32>
    %296 = arith.mulf %285, %254 : vector<8x128xf32>
    %297 = arith.addf %295, %296 : vector<8x128xf32>
    %298 = arith.index_cast %c6_i32 : i32 to index
    %c0_72 = arith.constant 0 : index
    %c0_73 = arith.constant 0 : index
    %299 = vector.load %arg3[%298, %c0_72, %c0_73] : memref<8x8x1xf32, #tpu.memory_space<vmem>>, vector<1x8x1xf32>
    %300 = vector.shape_cast %299 : vector<1x8x1xf32> to vector<8x1xf32>
    %301 = vector.broadcast %300 : vector<8x1xf32> to vector<8x128xf32>
    %302 = arith.mulf %297, %301 : vector<8x128xf32>
    %303 = arith.index_cast %c6_i32 : i32 to index
    %c0_74 = arith.constant 0 : index
    %c0_75 = arith.constant 0 : index
    %304 = vector.load %arg6[%303, %c0_74, %c0_75] : memref<8x8x128xf32, #tpu.memory_space<vmem>>, vector<1x8x128xf32>
    %305 = vector.shape_cast %304 : vector<1x8x128xf32> to vector<8x128xf32>
    %306 = vector.shape_cast %302 : vector<8x128xf32> to vector<1x8x128xf32>
    tpu.vector_store %arg6[%303, %c0_74, %c0_75], %306 {strides = array<i32>} : memref<8x8x128xf32, #tpu.memory_space<vmem>>, vector<1x8x128xf32>,
    %c7_i32 = arith.constant 7 : i32
    %307 = arith.index_cast %c7_i32 : i32 to index
    %c0_76 = arith.constant 0 : index
    %c0_77 = arith.constant 0 : index
    %308 = vector.load %arg2[%307, %c0_76, %c0_77] : memref<8x8x384xbf16, #tpu.memory_space<vmem>>, vector<1x8x384xbf16>
    %309 = vector.shape_cast %308 : vector<1x8x384xbf16> to vector<8x384xbf16>
    %310 = arith.extf %309 : vector<8x384xbf16> to vector<8x384xf32>
    %311 = arith.truncf %297 : vector<8x128xf32> to vector<8x128xbf16>
    %cst_78 = arith.constant dense<0.000000e+00> : vector<8x384xf32>
    %312 = tpu.matmul %311, %3, %cst_78 {dimension_numbers = #tpu.dot_dimension_numbers<[1], [0], [0], [1], [0, 0, 1, 1], [], []>} : vector<8x128xbf16>, vector<128x384xbf16>, vector<8x384xf32> -> vector<8x384xf32>
    %313 = vector.extract_strided_slice %310 {offsets = [0, 0], sizes = [8, 128], strides = [1, 1]} : vector<8x384xf32> to vector<8x128xf32>
    %314 = vector.extract_strided_slice %312 {offsets = [0, 0], sizes = [8, 128], strides = [1, 1]} : vector<8x384xf32> to vector<8x128xf32>
    %315 = arith.addf %313, %314 : vector<8x128xf32>
    %316 = arith.negf %315 : vector<8x128xf32>
    %317 = math.exp %316 : vector<8x128xf32>
    %cst_79 = arith.constant 1.000000e+00 : f32
    %318 = vector.broadcast %cst_79 : f32 to vector<8x128xf32>
    %319 = arith.addf %318, %317 : vector<8x128xf32>
    %320 = arith.divf %318, %319 : vector<8x128xf32>
    %321 = vector.extract_strided_slice %310 {offsets = [0, 128], sizes = [8, 128], strides = [1, 1]} : vector<8x384xf32> to vector<8x128xf32>
    %322 = vector.extract_strided_slice %312 {offsets = [0, 128], sizes = [8, 128], strides = [1, 1]} : vector<8x384xf32> to vector<8x128xf32>
    %323 = arith.addf %321, %322 : vector<8x128xf32>
    %324 = arith.negf %323 : vector<8x128xf32>
    %325 = math.exp %324 : vector<8x128xf32>
    %cst_80 = arith.constant 1.000000e+00 : f32
    %326 = vector.broadcast %cst_80 : f32 to vector<8x128xf32>
    %327 = arith.addf %326, %325 : vector<8x128xf32>
    %328 = arith.divf %326, %327 : vector<8x128xf32>
    %329 = vector.extract_strided_slice %310 {offsets = [0, 256], sizes = [8, 128], strides = [1, 1]} : vector<8x384xf32> to vector<8x128xf32>
    %330 = vector.extract_strided_slice %312 {offsets = [0, 256], sizes = [8, 128], strides = [1, 1]} : vector<8x384xf32> to vector<8x128xf32>
    %331 = vector.broadcast %4 : vector<1x128xf32> to vector<8x128xf32>
    %332 = arith.addf %330, %331 : vector<8x128xf32>
    %333 = arith.mulf %320, %332 : vector<8x128xf32>
    %334 = arith.addf %329, %333 : vector<8x128xf32>
    %335 = math.tanh %334 : vector<8x128xf32>
    %cst_81 = arith.constant 1.000000e+00 : f32
    %336 = vector.broadcast %cst_81 : f32 to vector<8x128xf32>
    %337 = arith.subf %336, %328 : vector<8x128xf32>
    %338 = arith.mulf %337, %335 : vector<8x128xf32>
    %339 = arith.mulf %328, %297 : vector<8x128xf32>
    %340 = arith.addf %338, %339 : vector<8x128xf32>
    %341 = arith.index_cast %c7_i32 : i32 to index
    %c0_82 = arith.constant 0 : index
    %c0_83 = arith.constant 0 : index
    %342 = vector.load %arg3[%341, %c0_82, %c0_83] : memref<8x8x1xf32, #tpu.memory_space<vmem>>, vector<1x8x1xf32>
    %343 = vector.shape_cast %342 : vector<1x8x1xf32> to vector<8x1xf32>
    %344 = vector.broadcast %343 : vector<8x1xf32> to vector<8x128xf32>
    %345 = arith.mulf %340, %344 : vector<8x128xf32>
    %346 = arith.index_cast %c7_i32 : i32 to index
    %c0_84 = arith.constant 0 : index
    %c0_85 = arith.constant 0 : index
    %347 = vector.load %arg6[%346, %c0_84, %c0_85] : memref<8x8x128xf32, #tpu.memory_space<vmem>>, vector<1x8x128xf32>
    %348 = vector.shape_cast %347 : vector<1x8x128xf32> to vector<8x128xf32>
    %349 = vector.shape_cast %345 : vector<8x128xf32> to vector<1x8x128xf32>
    tpu.vector_store %arg6[%346, %c0_84, %c0_85], %349 {strides = array<i32>} : memref<8x8x128xf32, #tpu.memory_space<vmem>>, vector<1x8x128xf32>,
    %c8_i32 = arith.constant 8 : i32
    %c0_86 = arith.constant 0 : index
    %c0_87 = arith.constant 0 : index
    %350 = vector.load %arg7[%c0_86, %c0_87] : memref<8x128xf32, #tpu.memory_space<vmem>>, vector<8x128xf32>
    tpu.vector_store %arg7[%c0_86, %c0_87], %340 {strides = array<i32>} : memref<8x128xf32, #tpu.memory_space<vmem>>, vector<8x128xf32>,
    return
  }
  func.func @transform_0(%arg0: i32, %arg1: i32) -> (i32, i32, i32) {
    %c0_i32 = arith.constant 0 : i32
    %c0_i32_0 = arith.constant 0 : i32
    return %arg1, %arg0, %c0_i32 : i32, i32, i32
  }
  func.func @transform_1(%arg0: i32, %arg1: i32) -> (i32, i32, i32) {
    %c0_i32 = arith.constant 0 : i32
    %c0_i32_0 = arith.constant 0 : i32
    return %arg1, %arg0, %c0_i32 : i32, i32, i32
  }
  func.func @transform_2(%arg0: i32, %arg1: i32) -> (i32, i32) {
    %c0_i32 = arith.constant 0 : i32
    %c0_i32_0 = arith.constant 0 : i32
    %c0_i32_1 = arith.constant 0 : i32
    return %c0_i32, %c0_i32_0 : i32, i32
  }
  func.func @transform_3(%arg0: i32, %arg1: i32) -> (i32, i32) {
    %c0_i32 = arith.constant 0 : i32
    %c0_i32_0 = arith.constant 0 : i32
    %c0_i32_1 = arith.constant 0 : i32
    return %c0_i32, %c0_i32_0 : i32, i32
  }
  func.func @transform_4(%arg0: i32, %arg1: i32) -> (i32, i32, i32) {
    %c0_i32 = arith.constant 0 : i32
    %c0_i32_0 = arith.constant 0 : i32
    return %arg1, %arg0, %c0_i32 : i32, i32, i32
  }
}

</mosaic_0001>

<bundles_post_ra>
// kernel: tpu_custom_call.1
= control target key start
LH: loop header
LB: loop body
LE: loop exit
PB: predicated region body
PF: predicated region fallthrough
CT: control target
= control target key end

     0   :  { %9 = vsyncpa [#allocation4], 0  ;;  %s2160_s0 = inlined_call_operand.hbm [shape: bf16[8,8,384], index: 0, kind: input, shape index: {}]   ;;  %s2161_s1 = inlined_call_operand.vmem [shape: f32[8,8,1], index: 1, kind: input, shape index: {}]   ;;  %s2162_s2 = inlined_call_operand.hbm [shape: bf16[128,384], index: 2, kind: input, shape index: {}]   ;;  %s2163_s3 = inlined_call_operand.vmem [shape: f32[1,128], index: 3, kind: input, shape index: {}]   ;;  %s2164_s4 = inlined_call_operand.hbm [shape: f32[8,8,128], index: 4, kind: output, shape index: {}]  }
   0x1   :  { %10 = vsyncpa [#allocation7], 0 }
   0x2   :  { %11 = vsyncpa [#allocation5], 0  ;;  %s1693_s15 = smov [#allocation3]   ;;  %s1621_s19 = scalar_lea.hbm %s2160_s0, 1536 }
   0x3   :  { %s17_s16 = sshll.u32 %s1693_s15, 4  ;;  %p1622_p0 = scmp.ne.s32.totalorder %s2160_s0, %s1621_s19  ;;  %s18_s16 = int_to_ptr.vmem [resolvable:$true] %s17_s16 }
   0x4   :  { %p1625_p1 = scmp.lt.u32.totalorder %s1621_s19, %s2160_s0 }
   0x6   :  { %p1627_p2 = pnand %p1625_p1, %p1622_p0 }
   0x8   :  { %1630 = shalt.err (!%p1627_p2)
}
   0x9   :  { %s1631_s24 = scalar_lea.vmem %s18_s16, 1536  ;;  %p1636_p4 = scmp.lt.s32.totalorder %s18_s16, %s18_s16 }
   0xa   :  { %p1632_p3 = scmp.ne.s32.totalorder %s18_s16, %s1631_s24  ;;  %p1637_p5 = scmp.lt.s32.totalorder %s1631_s24, %s1631_s24 }
   0xc   :  { %p1638_p6 = por %p1637_p5, %p1636_p4 }
   0xe   :  { %p1639_p7 = pnand %p1638_p6, %p1632_p3 }
  0x10   :  { %1642 = shalt.err (!%p1639_p7)
}
  0x11   :  { %s1694_s25 = smov 192   ;;  %s1695_s26 = smov 12  }
  0x12   :  { %23 = dma.hbm_to_vmem [thread:$0]  %s2160_s0, 1536, %s18_s16, [#allocation4], %s1694_s25, %s1694_s25, %s1695_s26  }
  0x13   :  { %s1696_s29 = smov [#allocation6]   ;;  %s1643_s7 = scalar_lea.hbm %s2162_s2, 3072 }
  0x14   :  { %s31_s30 = sshll.u32 %s1696_s29, 4  ;;  %p1644_p8 = scmp.ne.s32.totalorder %s2162_s2, %s1643_s7  ;;  %s32_s30 = int_to_ptr.vmem [resolvable:$true] %s31_s30 }
  0x15   :  { %p1647_p9 = scmp.lt.u32.totalorder %s1643_s7, %s2162_s2 }
  0x17   :  { %p1649_p10 = pnand %p1647_p9, %p1644_p8 }
  0x19   :  { %1652 = shalt.err (!%p1649_p10)
}
  0x1a   :  { %s1653_s12 = scalar_lea.vmem %s32_s30, 3072  ;;  %p1658_p12 = scmp.lt.s32.totalorder %s32_s30, %s32_s30 }
  0x1b   :  { %p1654_p11 = scmp.ne.s32.totalorder %s32_s30, %s1653_s12  ;;  %p1659_p13 = scmp.lt.s32.totalorder %s1653_s12, %s1653_s12 }
  0x1d   :  { %p1660_p0 = por %p1659_p13, %p1658_p12 }
  0x1f   :  { %p1661_p1 = pnand %p1660_p0, %p1654_p11 }
  0x21   :  { %1664 = shalt.err (!%p1661_p1)
}
  0x22   :  { %37 = dma.hbm_to_vmem [thread:$0]  %s2162_s2, 3072, %s32_s30, [#allocation7], %s1694_s25, %s1694_s25, %s1695_s26  }
  0x23   :  { %1687 = dma.done.wait [#allocation4], 1536  }
  0x24   :  { %1688 = vsyncadd [#allocation4], 4294965760 }
  0x25   :  { %1689 = dma.done.wait [#allocation7], 3072  }
  0x26   :  { %1690 = vsyncadd [#allocation7], 4294964224  ;;  %v1697_v0 = vmov 0.0   ;;  %v1698_v1 = vmov 0   ;;  %vm1699_vm0 = vmmov 0   ;;  %v329_v16 = vld [vmem:[%s2161_s1] sm:$0xff] }
  0x27   :  { %1316 = vmatprep.subr.bf16.mxu1 %v1697_v0  ;;  %252 = vmatprep.mubr.bf16.mxu0 %v1698_v1  ;;  %v1759_v2 = vld [vmem:[#allocation6 + $0x4] ss:$12 sps:$4 sm:$0xff]   ;;  %v1761_v3 = vld [vmem:[#allocation6] ss:$12 sps:$4 sm:$0xff]   ;;  %v1764_v4 = vld [vmem:[#allocation6 + $0x1c] ss:$12 sps:$4 sm:$0xff]  }
  0x28   :  { %1332 = vmatprep.mubr.msk.bf16.mxu1 %vm1699_vm0, %v1697_v0  ;;  %1487 = vset.pattern.permute.xlu0 %v1698_v1  ;;  %v1767_v5 = vld [vmem:[#allocation6 + $0x18] ss:$12 sps:$4 sm:$0xff]   ;;  %v1770_v6 = vld [vmem:[#allocation6 + $0x34] ss:$12 sps:$4 sm:$0xff]   ;;  %v1773_v7 = vld [vmem:[#allocation6 + $0x30] ss:$12 sps:$4 sm:$0xff]  }
  0x29   :  { %1488 = vset.pattern.permute.xlu1 %v1698_v1  ;;  %220 = vmatprep.subr.bf16.mxu0 %v1759_v2  ;;  %v1776_v8 = vld [vmem:[#allocation6 + $0x4c] ss:$12 sps:$4 sm:$0xff]   ;;  %v1778_v9 = vld [vmem:[#allocation6 + $0x8] ss:$12 sps:$4 sm:$0xff]   ;;  %v1785_v11 = vld [vmem:[#allocation6 + $0x64] ss:$12 sps:$4 sm:$0xff]  }
  0x2a   :  { %221 = vmatpush1.bf16.msra.mxu0 %v1761_v3  ;;  %v1781_v10 = vld [vmem:[#allocation6 + $0x48] ss:$12 sps:$4 sm:$0xff]   ;;  %1317 = vmatpush3.bf16.msra.mxu1 %v1778_v9  ;;  %v1788_v12 = vld [vmem:[#allocation6 + $0x20] ss:$12 sps:$4 sm:$0xff]   ;;  %v1794_v14 = vld [vmem:[#allocation6 + $0x38] ss:$12 sps:$4 sm:$0xff]  }
  0x2b   :  { %222 = vmatprep.subr.bf16.mxu0 %v1764_v4  ;;  %1318 = vmatprep.subr.bf16.mxu1 %v1697_v0  ;;  %v1790_v13 = vld [vmem:[#allocation6 + $0x60] ss:$12 sps:$4 sm:$0xff]   ;;  %v1797_v15 = vld [vmem:[#allocation6 + $0x7c] ss:$12 sps:$4 sm:$0xff]   ;;  %v1804_v17 = vld [vmem:[#allocation6 + $0x78] ss:$12 sps:$4 sm:$0xff]  }
  0x2c   :  { %v1807_v18 = vld [vmem:[#allocation6 + $0x50] ss:$12 sps:$4 sm:$0xff]   ;;  %v1810_v19 = vld [vmem:[#allocation6 + $0x94] ss:$12 sps:$4 sm:$0xff]   ;;  %332 = vperm.xlu0 %1487, %v329_v16   ;;  %v1820_v22 = vld [vmem:[#allocation6 + $0xac] ss:$12 sps:$4 sm:$0xff]  }
  0x2d   :  { %v1814_v20 = vld [vmem:[#allocation6 + $0x90] ss:$12 sps:$4 sm:$0xff]   ;;  %v1817_v21 = vld [vmem:[#allocation6 + $0x68] ss:$12 sps:$4 sm:$0xff]   ;;  %v1827_v24 = vld [vmem:[#allocation6 + $0x80] ss:$12 sps:$4 sm:$0xff]  }
  0x2e   :  { %223 = vmatpush1.bf16.msra.mxu0 %v1767_v5  ;;  %1319 = vmatpush3.bf16.msra.mxu1 %v1788_v12  ;;  %v1824_v23 = vld [vmem:[#allocation6 + $0xa8] ss:$12 sps:$4 sm:$0xff]   ;;  %v1833_v25 = vld [vmem:[#allocation6 + $0x98] ss:$12 sps:$4 sm:$0xff]   ;;  %v1700_v26 = vmov 0.0|0.0  }
  0x2f   :  { %224 = vmatprep.subr.bf16.mxu0 %v1770_v6  ;;  %1320 = vmatprep.subr.bf16.mxu1 %v1697_v0  ;;  %v1838_v27 = vld [vmem:[#allocation6 + $0xb0] ss:$12 sps:$4 sm:$0xff]   ;;  %v1225_v28 = vld [vmem:[%s2161_s1 + $0x8] sm:$0xff]  ;;  %v86_v29 = vld [vmem:[#allocation3] sm:$0xff] }
  0x30   :  { %451 = vperm.xlu0 %1487, %v1225_v28   ;;  %v88_v30 = vunpack.c.l.bf16 %v86_v29  ;;  %v89_v32 = vunpack.c.h.bf16 %v86_v29  ;;  %v1884_v47 = vld [vmem:[%s2163_s3] ss:$0 sm:$0xff]  ;;  %v1886_v48 = vld [vmem:[#allocation3 + $0x8] ss:$12 sps:$4 sm:$0xff]  }
  0x31   :  { %v90_v51 = vunpack.c.l.bf16 %v1886_v48  ;;  %v1228_v16 = vld [vmem:[%s2161_s1 + $0x10] sm:$0xff] }
  0x32   :  { %225 = vmatpush1.bf16.msra.mxu0 %v1773_v7  ;;  %1321 = vmatpush3.bf16.msra.mxu1 %v1794_v14 }
  0x33   :  { %226 = vmatprep.subr.bf16.mxu0 %v1776_v8  ;;  %1322 = vmatprep.subr.bf16.mxu1 %v1697_v0 }
  0x34   :  { %571 = vperm.xlu1 %1488, %v1228_v16  }
  0x36   :  { %227 = vmatpush1.bf16.msra.mxu0 %v1781_v10  ;;  %1323 = vmatpush3.bf16.msra.mxu1 %v1807_v18 }
  0x37   :  { %228 = vmatprep.subr.bf16.mxu0 %v1785_v11  ;;  %1324 = vmatprep.subr.bf16.mxu1 %v1697_v0 }
  0x3a   :  { %229 = vmatpush1.bf16.msra.mxu0 %v1790_v13  ;;  %1325 = vmatpush3.bf16.msra.mxu1 %v1817_v21 }
  0x3b   :  { %230 = vmatprep.subr.bf16.mxu0 %v1797_v15  ;;  %1326 = vmatprep.subr.bf16.mxu1 %v1697_v0 }
  0x3e   :  { %231 = vmatpush1.bf16.msra.mxu0 %v1804_v17  ;;  %1327 = vmatpush3.bf16.msra.mxu1 %v1827_v24 }
  0x3f   :  { %232 = vmatprep.subr.bf16.mxu0 %v1810_v19  ;;  %1328 = vmatprep.subr.bf16.mxu1 %v1697_v0 }
  0x42   :  { %233 = vmatpush1.bf16.msra.mxu0 %v1814_v20  ;;  %1329 = vmatpush3.bf16.msra.mxu1 %v1833_v25 }
  0x43   :  { %234 = vmatprep.subr.bf16.mxu0 %v1820_v22  ;;  %1330 = vmatprep.subr.bf16.mxu1 %v1697_v0 }
  0x46   :  { %235 = vmatpush1.bf16.msra.mxu0 %v1824_v23  ;;  %1331 = vmatpush3.bf16.msra.mxu1 %v1838_v27 }
  0x47   :  { %344 = vmatprep.subr.bf16.mxu0 %v1759_v2  ;;  %1336 = vmatprep.subr.bf16.mxu1 %v1697_v0 }
  0x49   :  { %253 = vmatmul.mubr.bf16.vlgmr.msra.gmra.mrb[0].mxu0 %v1700_v26  ;;  %1333 = vmatmul.mubr.bf16.vlgmr.msra.gmra.mrb[0].mxu1 %v1700_v26  ;;  %v338_v26 = vld [vmem:[#allocation3 + $0xc] sm:$0xff] }
  0x4a   :  { %345 = vmatpush1.bf16.msra.mxu0 %v1761_v3  ;;  %376 = vmatprep.mubr.bf16.mxu0 %v1698_v1  ;;  %v340_v28 = vunpack.c.l.bf16 %v338_v26 }
  0x4b   :  { %346 = vmatprep.subr.bf16.mxu0 %v1764_v4  ;;  %1337 = vmatpush3.bf16.msra.mxu1 %v1778_v9 }
  0x4c   :  { %1338 = vmatprep.subr.bf16.mxu1 %v1697_v0  ;;  %1352 = vmatprep.mubr.msk.bf16.mxu1 %vm1699_vm0, %v1697_v0 }
  0x4e   :  { %347 = vmatpush1.bf16.msra.mxu0 %v1767_v5 }
  0x4f   :  { %348 = vmatprep.subr.bf16.mxu0 %v1770_v6  ;;  %1339 = vmatpush3.bf16.msra.mxu1 %v1788_v12 }
  0x50   :  { %1340 = vmatprep.subr.bf16.mxu1 %v1697_v0 }
  0x52   :  { %349 = vmatpush1.bf16.msra.mxu0 %v1773_v7 }
  0x53   :  { %350 = vmatprep.subr.bf16.mxu0 %v1776_v8  ;;  %1341 = vmatpush3.bf16.msra.mxu1 %v1794_v14 }
  0x54   :  { %1342 = vmatprep.subr.bf16.mxu1 %v1697_v0 }
  0x56   :  { %351 = vmatpush1.bf16.msra.mxu0 %v1781_v10 }
  0x57   :  { %352 = vmatprep.subr.bf16.mxu0 %v1785_v11  ;;  %1343 = vmatpush3.bf16.msra.mxu1 %v1807_v18 }
  0x58   :  { %1344 = vmatprep.subr.bf16.mxu1 %v1697_v0 }
  0x5a   :  { %353 = vmatpush1.bf16.msra.mxu0 %v1790_v13 }
  0x5b   :  { %354 = vmatprep.subr.bf16.mxu0 %v1797_v15  ;;  %1345 = vmatpush3.bf16.msra.mxu1 %v1817_v21 }
  0x5c   :  { %1346 = vmatprep.subr.bf16.mxu1 %v1697_v0 }
  0x5e   :  { %355 = vmatpush1.bf16.msra.mxu0 %v1804_v17 }
  0x5f   :  { %356 = vmatprep.subr.bf16.mxu0 %v1810_v19  ;;  %1347 = vmatpush3.bf16.msra.mxu1 %v1827_v24 }
  0x60   :  { %1348 = vmatprep.subr.bf16.mxu1 %v1697_v0 }
  0x62   :  { %357 = vmatpush1.bf16.msra.mxu0 %v1814_v20 }
  0x63   :  { %358 = vmatprep.subr.bf16.mxu0 %v1820_v22  ;;  %1349 = vmatpush3.bf16.msra.mxu1 %v1833_v25 }
  0x64   :  { %1350 = vmatprep.subr.bf16.mxu1 %v1697_v0 }
  0x66   :  { %359 = vmatpush1.bf16.msra.mxu0 %v1824_v23 }
  0x67   :  { %464 = vmatprep.subr.bf16.mxu0 %v1759_v2  ;;  %1351 = vmatpush3.bf16.msra.mxu1 %v1838_v27 }
  0x68   :  { %1356 = vmatprep.subr.bf16.mxu1 %v1697_v0 }
  0xab   :  { %v333_v60 = vpop.permute.xlu0 %332 }
 0x11c   :  { %v254_v31 = vpop.f32.mrb[0].mxu0  ;;  %v295_v40 = vpop.f32.mrb[0].mxu1 }
 0x11d   :  { %v301_v33 = vadd.f32 %v254_v31, %v88_v30  ;;  %v256_v34 = vpop.f32.mrb[1].mxu0  ;;  %v1334_v41 = vpop.f32.mrb[1].mxu1  ;;  %v321_v50 = vadd.f32 %v1884_v47, %v295_v40  ;;  %v341_v31 = vunpack.c.h.bf16 %v338_v26 }
 0x11e   :  { %v258_v35 = vpop.f32.mrb[2].mxu0  ;;  %v308_v38 = vadd.f32 %v256_v34, %v89_v32  ;;  %v298_v42 = vpop.f32.mrb[2].mxu1 }
 0x11f   :  { %v1220_v36 = vmul.f32 -1.442695, %v301_v33  ;;  %v259_v37 = vpop.f32.mrb[3].mxu0  ;;  %v1335_v43 = vpop.f32.mrb[3].mxu1 }
 0x120   :  { %v1221_v39 = vmul.f32 -1.442695, %v308_v38 }
 0x121   :  { %1521 = vpow2.f32 %v1220_v36 }
 0x122   :  { %1523 = vpow2.f32 %v1221_v39 }
 0x12b   :  { %v1522_v44 = vpop.eup %1521 }
 0x12c   :  { %v305_v45 = vadd.f32 1.0, %v1522_v44  ;;  %v1524_v46 = vpop.eup %1523 }
 0x12d   :  { %v312_v49 = vadd.f32 1.0, %v1524_v46  ;;  %v342_v46 = vunpack.c.h.bf16 %v1886_v48 }
 0x12e   :  { %1525 = vrcp.f32 %v305_v45 }
 0x12f   :  { %1527 = vrcp.f32 %v312_v49 }
 0x138   :  { %v1526_v52 = vpop.eup %1525 }
 0x139   :  { %v322_v53 = vmul.f32 %v1526_v52, %v321_v50  ;;  %v1528_v55 = vpop.eup %1527 }
 0x13a   :  { %v325_v56 = vsub.f32 1.0, %v1528_v55  ;;  %v327_v59 = vmul.f32 0.0, %v1528_v55 }
 0x13b   :  { %v323_v54 = vadd.f32 %v322_v53, %v90_v51 }
 0x13d   :  { %1529 = vtanh.f32 %v323_v54 }
 0x147   :  { %v1530_v57 = vpop.eup %1529 }
 0x148   :  { %v326_v58 = vmul.f32 %v1530_v57, %v325_v56 }
 0x14a   :  { %v1890_v61 = vadd.f32 %v327_v59, %v326_v58  ;;  %v452_v58 = vpop.permute.xlu0 %451 }
 0x14c   :  { %v335_v62 = vmul.f32 %v333_v60, %v1890_v61  ;;  %v343_v63 = vpack.c.bf16 %v1890_v61, %v1890_v61 }
 0x14e   :  { %336 = vst [vmem:[#allocation8] sm:$0xff] %v335_v62  ;;  %377 = vmatmul.mubr.bf16.vlgmr.msra.gmra.mrb[4].mxu0 %v343_v63  ;;  %1353 = vmatmul.mubr.bf16.vlgmr.msra.gmra.mrb[4].mxu1 %v343_v63  ;;  %v458_v62 = vld [vmem:[#allocation3 + $0x18] sm:$0xff] }
 0x14f   :  { %465 = vmatpush1.bf16.msra.mxu0 %v1761_v3  ;;  %1357 = vmatpush3.bf16.msra.mxu1 %v1778_v9  ;;  %v460_v63 = vunpack.c.l.bf16 %v458_v62 }
 0x150   :  { %466 = vmatprep.subr.bf16.mxu0 %v1764_v4  ;;  %1358 = vmatprep.subr.bf16.mxu1 %v1697_v0 }
 0x151   :  { %496 = vmatprep.mubr.bf16.mxu0 %v1698_v1  ;;  %1372 = vmatprep.mubr.msk.bf16.mxu1 %vm1699_vm0, %v1697_v0 }
 0x153   :  { %467 = vmatpush1.bf16.msra.mxu0 %v1767_v5  ;;  %1359 = vmatpush3.bf16.msra.mxu1 %v1788_v12 }
 0x154   :  { %468 = vmatprep.subr.bf16.mxu0 %v1770_v6  ;;  %1360 = vmatprep.subr.bf16.mxu1 %v1697_v0 }
 0x157   :  { %469 = vmatpush1.bf16.msra.mxu0 %v1773_v7  ;;  %1361 = vmatpush3.bf16.msra.mxu1 %v1794_v14 }
 0x158   :  { %470 = vmatprep.subr.bf16.mxu0 %v1776_v8  ;;  %1362 = vmatprep.subr.bf16.mxu1 %v1697_v0 }
 0x15b   :  { %471 = vmatpush1.bf16.msra.mxu0 %v1781_v10  ;;  %1363 = vmatpush3.bf16.msra.mxu1 %v1807_v18 }
 0x15c   :  { %472 = vmatprep.subr.bf16.mxu0 %v1785_v11  ;;  %1364 = vmatprep.subr.bf16.mxu1 %v1697_v0 }
 0x15f   :  { %473 = vmatpush1.bf16.msra.mxu0 %v1790_v13  ;;  %1365 = vmatpush3.bf16.msra.mxu1 %v1817_v21 }
 0x160   :  { %474 = vmatprep.subr.bf16.mxu0 %v1797_v15  ;;  %1366 = vmatprep.subr.bf16.mxu1 %v1697_v0 }
 0x163   :  { %475 = vmatpush1.bf16.msra.mxu0 %v1804_v17  ;;  %1367 = vmatpush3.bf16.msra.mxu1 %v1827_v24 }
 0x164   :  { %476 = vmatprep.subr.bf16.mxu0 %v1810_v19  ;;  %1368 = vmatprep.subr.bf16.mxu1 %v1697_v0 }
 0x167   :  { %477 = vmatpush1.bf16.msra.mxu0 %v1814_v20  ;;  %1369 = vmatpush3.bf16.msra.mxu1 %v1833_v25 }
 0x168   :  { %478 = vmatprep.subr.bf16.mxu0 %v1820_v22  ;;  %1370 = vmatprep.subr.bf16.mxu1 %v1697_v0 }
 0x16b   :  { %479 = vmatpush1.bf16.msra.mxu0 %v1824_v23  ;;  %1371 = vmatpush3.bf16.msra.mxu1 %v1838_v27 }
 0x16c   :  { %584 = vmatprep.subr.bf16.mxu0 %v1759_v2  ;;  %1376 = vmatprep.subr.bf16.mxu1 %v1697_v0 }
 0x221   :  { %v378_v29 = vpop.f32.mrb[4].mxu0  ;;  %v419_v30 = vpop.f32.mrb[4].mxu1 }
 0x222   :  { %v425_v32 = vadd.f32 %v378_v29, %v340_v28  ;;  %v380_v33 = vpop.f32.mrb[5].mxu0  ;;  %v1354_v34 = vpop.f32.mrb[5].mxu1  ;;  %v439_v49 = vadd.f32 %v1884_v47, %v419_v30  ;;  %v461_v28 = vunpack.c.h.bf16 %v458_v62 }
 0x223   :  { %v382_v35 = vpop.f32.mrb[6].mxu0  ;;  %v422_v36 = vpop.f32.mrb[6].mxu1  ;;  %v432_v40 = vadd.f32 %v380_v33, %v341_v31 }
 0x224   :  { %v1223_v37 = vmul.f32 -1.442695, %v425_v32  ;;  %v383_v38 = vpop.f32.mrb[7].mxu0  ;;  %v1355_v39 = vpop.f32.mrb[7].mxu1 }
 0x225   :  { %v1224_v41 = vmul.f32 -1.442695, %v432_v40 }
 0x226   :  { %1531 = vpow2.f32 %v1223_v37 }
 0x227   :  { %1533 = vpow2.f32 %v1224_v41 }
 0x230   :  { %v1532_v42 = vpop.eup %1531 }
 0x231   :  { %v429_v43 = vadd.f32 1.0, %v1532_v42  ;;  %v1534_v44 = vpop.eup %1533  ;;  %v1979_v42 = vld [vmem:[#allocation3 + $0x20] ss:$12 sps:$4 sm:$0xff]  }
 0x232   :  { %v436_v45 = vadd.f32 1.0, %v1534_v44  ;;  %v462_v44 = vunpack.c.l.bf16 %v1979_v42 }
 0x233   :  { %1535 = vrcp.f32 %v429_v43 }
 0x234   :  { %1537 = vrcp.f32 %v436_v45 }
 0x23d   :  { %v1536_v50 = vpop.eup %1535 }
 0x23e   :  { %v440_v51 = vmul.f32 %v1536_v50, %v439_v49  ;;  %v1538_v53 = vpop.eup %1537 }
 0x23f   :  { %v443_v54 = vsub.f32 1.0, %v1538_v53  ;;  %v445_v57 = vmul.f32 %v1538_v53, %v1890_v61  ;;  %v1231_v61 = vld [vmem:[%s2161_s1 + $0x18] sm:$0xff] }
 0x240   :  { %v441_v52 = vadd.f32 %v440_v51, %v342_v46  ;;  %691 = vperm.xlu1 %1488, %v1231_v61  }
 0x242   :  { %1539 = vtanh.f32 %v441_v52 }
 0x24c   :  { %v1540_v55 = vpop.eup %1539 }
 0x24d   :  { %v444_v56 = vmul.f32 %v1540_v55, %v443_v54 }
 0x24f   :  { %v1936_v59 = vadd.f32 %v445_v57, %v444_v56  ;;  %v572_v56 = vpop.permute.xlu1 %571 }
 0x251   :  { %v454_v60 = vmul.f32 %v452_v58, %v1936_v59  ;;  %v463_v48 = vpack.c.bf16 %v1936_v59, %v1936_v59 }
 0x253   :  { %456 = vst [vmem:[#allocation8 + $0x8] sm:$0xff] %v454_v60  ;;  %497 = vmatmul.mubr.bf16.vlgmr.msra.gmra.mrb[8].mxu0 %v463_v48  ;;  %1373 = vmatmul.mubr.bf16.vlgmr.msra.gmra.mrb[8].mxu1 %v463_v48  ;;  %v578_v48 = vld [vmem:[#allocation3 + $0x24] sm:$0xff] }
 0x254   :  { %585 = vmatpush1.bf16.msra.mxu0 %v1761_v3  ;;  %1377 = vmatpush3.bf16.msra.mxu1 %v1778_v9  ;;  %v580_v61 = vunpack.c.l.bf16 %v578_v48 }
 0x255   :  { %586 = vmatprep.subr.bf16.mxu0 %v1764_v4  ;;  %1378 = vmatprep.subr.bf16.mxu1 %v1697_v0 }
 0x256   :  { %616 = vmatprep.mubr.bf16.mxu0 %v1698_v1  ;;  %1392 = vmatprep.mubr.msk.bf16.mxu1 %vm1699_vm0, %v1697_v0 }
 0x258   :  { %587 = vmatpush1.bf16.msra.mxu0 %v1767_v5  ;;  %1379 = vmatpush3.bf16.msra.mxu1 %v1788_v12 }
 0x259   :  { %588 = vmatprep.subr.bf16.mxu0 %v1770_v6  ;;  %1380 = vmatprep.subr.bf16.mxu1 %v1697_v0 }
 0x25c   :  { %589 = vmatpush1.bf16.msra.mxu0 %v1773_v7  ;;  %1381 = vmatpush3.bf16.msra.mxu1 %v1794_v14 }
 0x25d   :  { %590 = vmatprep.subr.bf16.mxu0 %v1776_v8  ;;  %1382 = vmatprep.subr.bf16.mxu1 %v1697_v0 }
 0x260   :  { %591 = vmatpush1.bf16.msra.mxu0 %v1781_v10  ;;  %1383 = vmatpush3.bf16.msra.mxu1 %v1807_v18 }
 0x261   :  { %592 = vmatprep.subr.bf16.mxu0 %v1785_v11  ;;  %1384 = vmatprep.subr.bf16.mxu1 %v1697_v0 }
 0x264   :  { %593 = vmatpush1.bf16.msra.mxu0 %v1790_v13  ;;  %1385 = vmatpush3.bf16.msra.mxu1 %v1817_v21 }
 0x265   :  { %594 = vmatprep.subr.bf16.mxu0 %v1797_v15  ;;  %1386 = vmatprep.subr.bf16.mxu1 %v1697_v0 }
 0x268   :  { %595 = vmatpush1.bf16.msra.mxu0 %v1804_v17  ;;  %1387 = vmatpush3.bf16.msra.mxu1 %v1827_v24 }
 0x269   :  { %596 = vmatprep.subr.bf16.mxu0 %v1810_v19  ;;  %1388 = vmatprep.subr.bf16.mxu1 %v1697_v0 }
 0x26c   :  { %597 = vmatpush1.bf16.msra.mxu0 %v1814_v20  ;;  %1389 = vmatpush3.bf16.msra.mxu1 %v1833_v25 }
 0x26d   :  { %598 = vmatprep.subr.bf16.mxu0 %v1820_v22  ;;  %1390 = vmatprep.subr.bf16.mxu1 %v1697_v0 }
 0x270   :  { %599 = vmatpush1.bf16.msra.mxu0 %v1824_v23  ;;  %1391 = vmatpush3.bf16.msra.mxu1 %v1838_v27 }
 0x271   :  { %704 = vmatprep.subr.bf16.mxu0 %v1759_v2  ;;  %1396 = vmatprep.subr.bf16.mxu1 %v1697_v0 }
 0x326   :  { %v498_v16 = vpop.f32.mrb[8].mxu0  ;;  %v539_v26 = vpop.f32.mrb[8].mxu1 }
 0x327   :  { %v545_v29 = vadd.f32 %v498_v16, %v460_v63  ;;  %v500_v30 = vpop.f32.mrb[9].mxu0  ;;  %v1374_v31 = vpop.f32.mrb[9].mxu1  ;;  %v559_v45 = vadd.f32 %v1884_v47, %v539_v26  ;;  %v581_v16 = vunpack.c.h.bf16 %v578_v48 }
 0x328   :  { %v502_v32 = vpop.f32.mrb[10].mxu0  ;;  %v542_v33 = vpop.f32.mrb[10].mxu1  ;;  %v552_v37 = vadd.f32 %v500_v30, %v461_v28 }
 0x329   :  { %v1226_v34 = vmul.f32 -1.442695, %v545_v29  ;;  %v503_v35 = vpop.f32.mrb[11].mxu0  ;;  %v1375_v36 = vpop.f32.mrb[11].mxu1 }
 0x32a   :  { %v1227_v38 = vmul.f32 -1.442695, %v552_v37 }
 0x32b   :  { %1541 = vpow2.f32 %v1226_v34 }
 0x32c   :  { %1543 = vpow2.f32 %v1227_v38 }
 0x335   :  { %v1542_v39 = vpop.eup %1541 }
 0x336   :  { %v549_v40 = vadd.f32 1.0, %v1542_v39  ;;  %v1544_v41 = vpop.eup %1543 }
 0x337   :  { %v556_v43 = vadd.f32 1.0, %v1544_v41  ;;  %v582_v41 = vunpack.c.h.bf16 %v1979_v42 }
 0x338   :  { %1545 = vrcp.f32 %v549_v40 }
 0x339   :  { %1547 = vrcp.f32 %v556_v43 }
 0x342   :  { %v1546_v46 = vpop.eup %1545 }
 0x343   :  { %v560_v49 = vmul.f32 %v1546_v46, %v559_v45  ;;  %v1548_v51 = vpop.eup %1547 }
 0x344   :  { %v563_v52 = vsub.f32 1.0, %v1548_v51  ;;  %v565_v55 = vmul.f32 %v1548_v51, %v1936_v59  ;;  %v1234_v59 = vld [vmem:[%s2161_s1 + $0x20] sm:$0xff] }
 0x345   :  { %v561_v50 = vadd.f32 %v560_v49, %v462_v44  ;;  %811 = vperm.xlu0 %1487, %v1234_v59  }
 0x347   :  { %1549 = vtanh.f32 %v561_v50 }
 0x351   :  { %v1550_v53 = vpop.eup %1549 }
 0x352   :  { %v564_v54 = vmul.f32 %v1550_v53, %v563_v52 }
 0x354   :  { %v1984_v57 = vadd.f32 %v565_v55, %v564_v54  ;;  %v692_v54 = vpop.permute.xlu1 %691 }
 0x356   :  { %v574_v58 = vmul.f32 %v572_v56, %v1984_v57  ;;  %v583_v60 = vpack.c.bf16 %v1984_v57, %v1984_v57 }
 0x358   :  { %576 = vst [vmem:[#allocation8 + $0x10] sm:$0xff] %v574_v58  ;;  %617 = vmatmul.mubr.bf16.vlgmr.msra.gmra.mrb[12].mxu0 %v583_v60  ;;  %1393 = vmatmul.mubr.bf16.vlgmr.msra.gmra.mrb[12].mxu1 %v583_v60  ;;  %v698_v58 = vld [vmem:[#allocation3 + $0x30] sm:$0xff] }
 0x359   :  { %705 = vmatpush1.bf16.msra.mxu0 %v1761_v3  ;;  %1397 = vmatpush3.bf16.msra.mxu1 %v1778_v9  ;;  %v700_v60 = vunpack.c.l.bf16 %v698_v58 }
 0x35a   :  { %706 = vmatprep.subr.bf16.mxu0 %v1764_v4  ;;  %1398 = vmatprep.subr.bf16.mxu1 %v1697_v0 }
 0x35b   :  { %736 = vmatprep.mubr.bf16.mxu0 %v1698_v1  ;;  %1412 = vmatprep.mubr.msk.bf16.mxu1 %vm1699_vm0, %v1697_v0 }
 0x35d   :  { %707 = vmatpush1.bf16.msra.mxu0 %v1767_v5  ;;  %1399 = vmatpush3.bf16.msra.mxu1 %v1788_v12 }
 0x35e   :  { %708 = vmatprep.subr.bf16.mxu0 %v1770_v6  ;;  %1400 = vmatprep.subr.bf16.mxu1 %v1697_v0 }
 0x361   :  { %709 = vmatpush1.bf16.msra.mxu0 %v1773_v7  ;;  %1401 = vmatpush3.bf16.msra.mxu1 %v1794_v14 }
 0x362   :  { %710 = vmatprep.subr.bf16.mxu0 %v1776_v8  ;;  %1402 = vmatprep.subr.bf16.mxu1 %v1697_v0 }
 0x365   :  { %711 = vmatpush1.bf16.msra.mxu0 %v1781_v10  ;;  %1403 = vmatpush3.bf16.msra.mxu1 %v1807_v18 }
 0x366   :  { %712 = vmatprep.subr.bf16.mxu0 %v1785_v11  ;;  %1404 = vmatprep.subr.bf16.mxu1 %v1697_v0 }
 0x369   :  { %713 = vmatpush1.bf16.msra.mxu0 %v1790_v13  ;;  %1405 = vmatpush3.bf16.msra.mxu1 %v1817_v21 }
 0x36a   :  { %714 = vmatprep.subr.bf16.mxu0 %v1797_v15  ;;  %1406 = vmatprep.subr.bf16.mxu1 %v1697_v0 }
 0x36d   :  { %715 = vmatpush1.bf16.msra.mxu0 %v1804_v17  ;;  %1407 = vmatpush3.bf16.msra.mxu1 %v1827_v24 }
 0x36e   :  { %716 = vmatprep.subr.bf16.mxu0 %v1810_v19  ;;  %1408 = vmatprep.subr.bf16.mxu1 %v1697_v0 }
 0x371   :  { %717 = vmatpush1.bf16.msra.mxu0 %v1814_v20  ;;  %1409 = vmatpush3.bf16.msra.mxu1 %v1833_v25 }
 0x372   :  { %718 = vmatprep.subr.bf16.mxu0 %v1820_v22  ;;  %1410 = vmatprep.subr.bf16.mxu1 %v1697_v0 }
 0x375   :  { %719 = vmatpush1.bf16.msra.mxu0 %v1824_v23  ;;  %1411 = vmatpush3.bf16.msra.mxu1 %v1838_v27 }
 0x376   :  { %824 = vmatprep.subr.bf16.mxu0 %v1759_v2  ;;  %1416 = vmatprep.subr.bf16.mxu1 %v1697_v0 }
 0x42b   :  { %v618_v62 = vpop.f32.mrb[12].mxu0  ;;  %v659_v63 = vpop.f32.mrb[12].mxu1 }
 0x42c   :  { %v665_v26 = vadd.f32 %v618_v62, %v580_v61  ;;  %v620_v28 = vpop.f32.mrb[13].mxu0  ;;  %v1394_v29 = vpop.f32.mrb[13].mxu1  ;;  %v679_v43 = vadd.f32 %v1884_v47, %v659_v63  ;;  %v701_v61 = vunpack.c.h.bf16 %v698_v58 }
 0x42d   :  { %v622_v30 = vpop.f32.mrb[14].mxu0  ;;  %v662_v31 = vpop.f32.mrb[14].mxu1  ;;  %v672_v35 = vadd.f32 %v620_v28, %v581_v16 }
 0x42e   :  { %v1229_v32 = vmul.f32 -1.442695, %v665_v26  ;;  %v623_v33 = vpop.f32.mrb[15].mxu0  ;;  %v1395_v34 = vpop.f32.mrb[15].mxu1 }
 0x42f   :  { %v1230_v36 = vmul.f32 -1.442695, %v672_v35 }
 0x430   :  { %1551 = vpow2.f32 %v1229_v32 }
 0x431   :  { %1553 = vpow2.f32 %v1230_v36  ;;  %v2073_v36 = vld [vmem:[#allocation3 + $0x38] ss:$12 sps:$4 sm:$0xff]  }
 0x43a   :  { %v1552_v37 = vpop.eup %1551 }
 0x43b   :  { %v669_v38 = vadd.f32 1.0, %v1552_v37  ;;  %v1554_v39 = vpop.eup %1553 }
 0x43c   :  { %v676_v40 = vadd.f32 1.0, %v1554_v39 }
 0x43d   :  { %1555 = vrcp.f32 %v669_v38  ;;  %v702_v38 = vunpack.c.l.bf16 %v2073_v36 }
 0x43e   :  { %1557 = vrcp.f32 %v676_v40 }
 0x447   :  { %v1556_v44 = vpop.eup %1555 }
 0x448   :  { %v680_v45 = vmul.f32 %v1556_v44, %v679_v43  ;;  %v1558_v49 = vpop.eup %1557 }
 0x449   :  { %v683_v50 = vsub.f32 1.0, %v1558_v49  ;;  %v685_v53 = vmul.f32 %v1558_v49, %v1984_v57  ;;  %v1237_v57 = vld [vmem:[%s2161_s1 + $0x28] sm:$0xff] }
 0x44a   :  { %v681_v46 = vadd.f32 %v680_v45, %v582_v41  ;;  %931 = vperm.xlu1 %1488, %v1237_v57  }
 0x44c   :  { %1559 = vtanh.f32 %v681_v46 }
 0x456   :  { %v1560_v51 = vpop.eup %1559 }
 0x457   :  { %v684_v52 = vmul.f32 %v1560_v51, %v683_v50  ;;  %v812_v51 = vpop.permute.xlu0 %811 }
 0x459   :  { %v2030_v55 = vadd.f32 %v685_v53, %v684_v52 }
 0x45b   :  { %v694_v56 = vmul.f32 %v692_v54, %v2030_v55  ;;  %v703_v42 = vpack.c.bf16 %v2030_v55, %v2030_v55 }
 0x45d   :  { %696 = vst [vmem:[#allocation8 + $0x18] sm:$0xff] %v694_v56  ;;  %737 = vmatmul.mubr.bf16.vlgmr.msra.gmra.mrb[16].mxu0 %v703_v42  ;;  %1413 = vmatmul.mubr.bf16.vlgmr.msra.gmra.mrb[16].mxu1 %v703_v42  ;;  %v822_v42 = vunpack.c.h.bf16 %v2073_v36  ;;  %v1608_v36 = vld [vmem:[#allocation6 + $0x30] ss:$12 sps:$4 sm:$0xff]  }
 0x45e   :  { %825 = vmatpush1.bf16.msra.mxu0 %v1761_v3  ;;  %1417 = vmatpush3.bf16.msra.mxu1 %v1778_v9 }
 0x45f   :  { %826 = vmatprep.subr.bf16.mxu0 %v1764_v4  ;;  %1418 = vmatprep.subr.bf16.mxu1 %v1697_v0 }
 0x460   :  { %856 = vmatprep.mubr.bf16.mxu0 %v1698_v1  ;;  %1432 = vmatprep.mubr.msk.bf16.mxu1 %vm1699_vm0, %v1697_v0 }
 0x462   :  { %827 = vmatpush1.bf16.msra.mxu0 %v1767_v5  ;;  %1419 = vmatpush3.bf16.msra.mxu1 %v1788_v12 }
 0x463   :  { %828 = vmatprep.subr.bf16.mxu0 %v1770_v6  ;;  %1420 = vmatprep.subr.bf16.mxu1 %v1697_v0 }
 0x466   :  { %829 = vmatpush1.bf16.msra.mxu0 %v1773_v7  ;;  %1421 = vmatpush3.bf16.msra.mxu1 %v1794_v14 }
 0x467   :  { %830 = vmatprep.subr.bf16.mxu0 %v1776_v8  ;;  %1422 = vmatprep.subr.bf16.mxu1 %v1697_v0 }
 0x46a   :  { %831 = vmatpush1.bf16.msra.mxu0 %v1781_v10  ;;  %1423 = vmatpush3.bf16.msra.mxu1 %v1807_v18 }
 0x46b   :  { %832 = vmatprep.subr.bf16.mxu0 %v1785_v11  ;;  %1424 = vmatprep.subr.bf16.mxu1 %v1697_v0 }
 0x46e   :  { %833 = vmatpush1.bf16.msra.mxu0 %v1790_v13  ;;  %1425 = vmatpush3.bf16.msra.mxu1 %v1817_v21 }
 0x46f   :  { %834 = vmatprep.subr.bf16.mxu0 %v1797_v15  ;;  %1426 = vmatprep.subr.bf16.mxu1 %v1697_v0 }
 0x472   :  { %835 = vmatpush1.bf16.msra.mxu0 %v1804_v17  ;;  %1427 = vmatpush3.bf16.msra.mxu1 %v1827_v24 }
 0x473   :  { %836 = vmatprep.subr.bf16.mxu0 %v1810_v19  ;;  %1428 = vmatprep.subr.bf16.mxu1 %v1697_v0 }
 0x476   :  { %837 = vmatpush1.bf16.msra.mxu0 %v1814_v20  ;;  %1429 = vmatpush3.bf16.msra.mxu1 %v1833_v25 }
 0x477   :  { %838 = vmatprep.subr.bf16.mxu0 %v1820_v22  ;;  %1430 = vmatprep.subr.bf16.mxu1 %v1697_v0 }
 0x47a   :  { %839 = vmatpush1.bf16.msra.mxu0 %v1824_v23  ;;  %1431 = vmatpush3.bf16.msra.mxu1 %v1838_v27 }
 0x47b   :  { %944 = vmatprep.subr.bf16.mxu0 %v1759_v2  ;;  %1436 = vmatprep.subr.bf16.mxu1 %v1697_v0 }
 0x530   :  { %v738_v59 = vpop.f32.mrb[16].mxu0  ;;  %v779_v48 = vpop.f32.mrb[16].mxu1 }
 0x531   :  { %v785_v62 = vadd.f32 %v738_v59, %v700_v60  ;;  %v740_v63 = vpop.f32.mrb[17].mxu0  ;;  %v1414_v16 = vpop.f32.mrb[17].mxu1  ;;  %v799_v39 = vadd.f32 %v1884_v47, %v779_v48 }
 0x532   :  { %v742_v26 = vpop.f32.mrb[18].mxu0  ;;  %v782_v28 = vpop.f32.mrb[18].mxu1  ;;  %v792_v31 = vadd.f32 %v740_v63, %v701_v61 }
 0x533   :  { %v1232_v29 = vmul.f32 -1.442695, %v785_v62  ;;  %v743_v30 = vpop.f32.mrb[19].mxu0  ;;  %v1415_v2 = vpop.f32.mrb[19].mxu1 }
 0x534   :  { %v1233_v32 = vmul.f32 -1.442695, %v792_v31  ;;  %v932_v26 = vpop.permute.xlu1 %931  ;;  %v1602_v2 = vld [vmem:[#allocation6] ss:$12 sps:$4 sm:$0xff]   ;;  %v1603_v31 = vld [vmem:[#allocation6 + $0x8] ss:$12 sps:$4 sm:$0xff]  }
 0x535   :  { %1561 = vpow2.f32 %v1232_v29 }
 0x536   :  { %1563 = vpow2.f32 %v1233_v32  ;;  %v1604_v32 = vld [vmem:[#allocation6 + $0x1c] ss:$12 sps:$4 sm:$0xff]  }
 0x53f   :  { %v1562_v33 = vpop.eup %1561 }
 0x540   :  { %v789_v34 = vadd.f32 1.0, %v1562_v33  ;;  %v1564_v35 = vpop.eup %1563  ;;  %v1605_v33 = vld [vmem:[#allocation6 + $0x18] ss:$12 sps:$4 sm:$0xff]  }
 0x541   :  { %v796_v37 = vadd.f32 1.0, %v1564_v35  ;;  %v1607_v35 = vld [vmem:[#allocation6 + $0x34] ss:$12 sps:$4 sm:$0xff]  }
 0x542   :  { %1565 = vrcp.f32 %v789_v34  ;;  %v1606_v34 = vld [vmem:[#allocation6 + $0x20] ss:$12 sps:$4 sm:$0xff]  }
 0x543   :  { %1567 = vrcp.f32 %v796_v37  ;;  %v1609_v37 = vld [vmem:[#allocation6 + $0x38] ss:$12 sps:$4 sm:$0xff]  }
 0x54c   :  { %v1566_v40 = vpop.eup %1565 }
 0x54d   :  { %v800_v41 = vmul.f32 %v1566_v40, %v799_v39  ;;  %v1568_v44 = vpop.eup %1567  ;;  %v1612_v39 = vld [vmem:[#allocation6 + $0x50] ss:$12 sps:$4 sm:$0xff]  }
 0x54e   :  { %v803_v45 = vsub.f32 1.0, %v1568_v44  ;;  %v805_v50 = vmul.f32 %v1568_v44, %v2030_v55  ;;  %v1613_v40 = vld [vmem:[#allocation6 + $0x64] ss:$12 sps:$4 sm:$0xff]  }
 0x54f   :  { %v801_v43 = vadd.f32 %v800_v41, %v702_v38  ;;  %v1610_v38 = vld [vmem:[#allocation6 + $0x4c] ss:$12 sps:$4 sm:$0xff]  }
 0x550   :  { %v1614_v41 = vld [vmem:[#allocation6 + $0x60] ss:$12 sps:$4 sm:$0xff]   ;;  %v1616_v44 = vld [vmem:[#allocation6 + $0x78] ss:$12 sps:$4 sm:$0xff]  }
 0x551   :  { %1569 = vtanh.f32 %v801_v43  ;;  %v1615_v43 = vld [vmem:[#allocation6 + $0x7c] ss:$12 sps:$4 sm:$0xff]  }
 0x55b   :  { %v1570_v46 = vpop.eup %1569 }
 0x55c   :  { %v804_v49 = vmul.f32 %v1570_v46, %v803_v45  ;;  %v1617_v45 = vld [vmem:[#allocation6 + $0x94] ss:$12 sps:$4 sm:$0xff]   ;;  %v1618_v46 = vld [vmem:[#allocation6 + $0x90] ss:$12 sps:$4 sm:$0xff]  }
 0x55e   :  { %v2078_v52 = vadd.f32 %v805_v50, %v804_v49  ;;  %v1619_v49 = vld [vmem:[#allocation6 + $0xac] ss:$12 sps:$4 sm:$0xff]  }
 0x55f   :  { %v938_v50 = vld [vmem:[#allocation3 + $0x48] sm:$0xff] }
 0x560   :  { %v814_v53 = vmul.f32 %v812_v51, %v2078_v52  ;;  %v823_v54 = vpack.c.bf16 %v2078_v52, %v2078_v52  ;;  %v940_v51 = vunpack.c.l.bf16 %v938_v50 }
 0x562   :  { %816 = vst [vmem:[#allocation8 + $0x20] sm:$0xff] %v814_v53  ;;  %857 = vmatmul.mubr.bf16.vlgmr.msra.gmra.mrb[20].mxu0 %v823_v54  ;;  %1433 = vmatmul.mubr.bf16.vlgmr.msra.gmra.mrb[20].mxu1 %v823_v54  ;;  %v941_v54 = vunpack.c.h.bf16 %v938_v50 }
 0x563   :  { %945 = vmatpush1.bf16.msra.mxu0 %v1761_v3  ;;  %1437 = vmatpush3.bf16.msra.mxu1 %v1778_v9  ;;  %v1601_v3 = vld [vmem:[#allocation6 + $0x4] ss:$12 sps:$4 sm:$0xff]  }
 0x564   :  { %946 = vmatprep.subr.bf16.mxu0 %v1764_v4  ;;  %1438 = vmatprep.subr.bf16.mxu1 %v1697_v0  ;;  %v1240_v4 = vld [vmem:[%s2161_s1 + $0x30] sm:$0xff] }
 0x565   :  { %976 = vmatprep.mubr.bf16.mxu0 %v1698_v1  ;;  %1452 = vmatprep.mubr.msk.bf16.mxu1 %vm1699_vm0, %v1697_v0 }
 0x566   :  { %1051 = vperm.xlu0 %1487, %v1240_v4  }
 0x567   :  { %947 = vmatpush1.bf16.msra.mxu0 %v1767_v5  ;;  %1439 = vmatpush3.bf16.msra.mxu1 %v1788_v12  ;;  %v818_v5 = vld [vmem:[#allocation3 + $0x3c] sm:$0xff] }
 0x568   :  { %948 = vmatprep.subr.bf16.mxu0 %v1770_v6  ;;  %1440 = vmatprep.subr.bf16.mxu1 %v1697_v0  ;;  %v820_v6 = vunpack.c.l.bf16 %v818_v5  ;;  %v821_v9 = vunpack.c.h.bf16 %v818_v5 }
 0x56b   :  { %949 = vmatpush1.bf16.msra.mxu0 %v1773_v7  ;;  %1441 = vmatpush3.bf16.msra.mxu1 %v1794_v14 }
 0x56c   :  { %950 = vmatprep.subr.bf16.mxu0 %v1776_v8  ;;  %1442 = vmatprep.subr.bf16.mxu1 %v1697_v0 }
 0x56f   :  { %951 = vmatpush1.bf16.msra.mxu0 %v1781_v10  ;;  %1443 = vmatpush3.bf16.msra.mxu1 %v1807_v18 }
 0x570   :  { %952 = vmatprep.subr.bf16.mxu0 %v1785_v11  ;;  %1444 = vmatprep.subr.bf16.mxu1 %v1697_v0 }
 0x573   :  { %953 = vmatpush1.bf16.msra.mxu0 %v1790_v13  ;;  %1445 = vmatpush3.bf16.msra.mxu1 %v1817_v21 }
 0x574   :  { %954 = vmatprep.subr.bf16.mxu0 %v1797_v15  ;;  %1446 = vmatprep.subr.bf16.mxu1 %v1697_v0 }
 0x577   :  { %955 = vmatpush1.bf16.msra.mxu0 %v1804_v17  ;;  %1447 = vmatpush3.bf16.msra.mxu1 %v1827_v24 }
 0x578   :  { %956 = vmatprep.subr.bf16.mxu0 %v1810_v19  ;;  %1448 = vmatprep.subr.bf16.mxu1 %v1697_v0 }
 0x57b   :  { %957 = vmatpush1.bf16.msra.mxu0 %v1814_v20  ;;  %1449 = vmatpush3.bf16.msra.mxu1 %v1833_v25 }
 0x57c   :  { %958 = vmatprep.subr.bf16.mxu0 %v1820_v22  ;;  %1450 = vmatprep.subr.bf16.mxu1 %v1697_v0 }
 0x57f   :  { %959 = vmatpush1.bf16.msra.mxu0 %v1824_v23  ;;  %1451 = vmatpush3.bf16.msra.mxu1 %v1838_v27 }
 0x580   :  { %1064 = vmatprep.subr.bf16.mxu0 %v1601_v3  ;;  %1456 = vmatprep.subr.bf16.mxu1 %v1697_v0 }
 0x635   :  { %v858_v7 = vpop.f32.mrb[20].mxu0  ;;  %v899_v8 = vpop.f32.mrb[20].mxu1 }
 0x636   :  { %v905_v10 = vadd.f32 %v858_v7, %v820_v6  ;;  %v860_v11 = vpop.f32.mrb[21].mxu0  ;;  %v1434_v12 = vpop.f32.mrb[21].mxu1  ;;  %v919_v57 = vadd.f32 %v1884_v47, %v899_v8 }
 0x637   :  { %v862_v13 = vpop.f32.mrb[22].mxu0  ;;  %v902_v14 = vpop.f32.mrb[22].mxu1  ;;  %v912_v19 = vadd.f32 %v860_v11, %v821_v9 }
 0x638   :  { %v1235_v15 = vmul.f32 -1.442695, %v905_v10  ;;  %v863_v17 = vpop.f32.mrb[23].mxu0  ;;  %v1435_v18 = vpop.f32.mrb[23].mxu1  ;;  %v939_v13 = vld [vmem:[#allocation3 + $0x50] ss:$12 sps:$4 sm:$0xff]  }
 0x639   :  { %v1236_v20 = vmul.f32 -1.442695, %v912_v19 }
 0x63a   :  { %1571 = vpow2.f32 %v1235_v15  ;;  %v942_v15 = vunpack.c.l.bf16 %v939_v13 }
 0x63b   :  { %1573 = vpow2.f32 %v1236_v20 }
 0x644   :  { %v1572_v22 = vpop.eup %1571 }
 0x645   :  { %v909_v23 = vadd.f32 1.0, %v1572_v22  ;;  %v1574_v55 = vpop.eup %1573 }
 0x646   :  { %v916_v56 = vadd.f32 1.0, %v1574_v55 }
 0x647   :  { %1575 = vrcp.f32 %v909_v23 }
 0x648   :  { %1577 = vrcp.f32 %v916_v56 }
 0x651   :  { %v1576_v58 = vpop.eup %1575 }
 0x652   :  { %v920_v60 = vmul.f32 %v1576_v58, %v919_v57  ;;  %v1578_v48 = vpop.eup %1577  ;;  %v1052_v57 = vpop.permute.xlu0 %1051 }
 0x653   :  { %v923_v61 = vsub.f32 1.0, %v1578_v48  ;;  %v925_v16 = vmul.f32 %v1578_v48, %v2078_v52  ;;  %v1058_v48 = vld [vmem:[#allocation3 + $0x54] sm:$0xff] }
 0x654   :  { %v921_v59 = vadd.f32 %v920_v60, %v822_v42 }
 0x656   :  { %1579 = vtanh.f32 %v921_v59 }
 0x660   :  { %v1580_v62 = vpop.eup %1579 }
 0x661   :  { %v924_v63 = vmul.f32 %v1580_v62, %v923_v61  ;;  %v1060_v61 = vunpack.c.l.bf16 %v1058_v48 }
 0x663   :  { %v2123_v28 = vadd.f32 %v925_v16, %v924_v63  ;;  %v1061_v16 = vunpack.c.h.bf16 %v1058_v48 }
 0x665   :  { %v934_v29 = vmul.f32 %v932_v26, %v2123_v28  ;;  %v943_v30 = vpack.c.bf16 %v2123_v28, %v2123_v28 }
 0x667   :  { %936 = vst [vmem:[#allocation8 + $0x28] sm:$0xff] %v934_v29  ;;  %977 = vmatmul.mubr.bf16.vlgmr.msra.gmra.mrb[24].mxu0 %v943_v30  ;;  %1453 = vmatmul.mubr.bf16.vlgmr.msra.gmra.mrb[24].mxu1 %v943_v30 }
 0x668   :  { %1065 = vmatpush1.bf16.msra.mxu0 %v1602_v2  ;;  %1457 = vmatpush3.bf16.msra.mxu1 %v1603_v31 }
 0x669   :  { %1066 = vmatprep.subr.bf16.mxu0 %v1604_v32  ;;  %1458 = vmatprep.subr.bf16.mxu1 %v1697_v0 }
 0x66a   :  { %1096 = vmatprep.mubr.bf16.mxu0 %v1698_v1  ;;  %1472 = vmatprep.mubr.msk.bf16.mxu1 %vm1699_vm0, %v1697_v0  ;;  %v1611_v1 = vld [vmem:[#allocation6 + $0x48] ss:$12 sps:$4 sm:$0xff]  }
 0x66c   :  { %1067 = vmatpush1.bf16.msra.mxu0 %v1605_v33  ;;  %1459 = vmatpush3.bf16.msra.mxu1 %v1606_v34 }
 0x66d   :  { %1068 = vmatprep.subr.bf16.mxu0 %v1607_v35  ;;  %1460 = vmatprep.subr.bf16.mxu1 %v1697_v0 }
 0x670   :  { %1069 = vmatpush1.bf16.msra.mxu0 %v1608_v36  ;;  %1461 = vmatpush3.bf16.msra.mxu1 %v1609_v37 }
 0x671   :  { %1070 = vmatprep.subr.bf16.mxu0 %v1610_v38  ;;  %1462 = vmatprep.subr.bf16.mxu1 %v1697_v0 }
 0x674   :  { %1071 = vmatpush1.bf16.msra.mxu0 %v1611_v1  ;;  %1463 = vmatpush3.bf16.msra.mxu1 %v1612_v39  ;;  %v1062_v39 = vunpack.c.h.bf16 %v939_v13 }
 0x675   :  { %1072 = vmatprep.subr.bf16.mxu0 %v1613_v40  ;;  %1464 = vmatprep.subr.bf16.mxu1 %v1697_v0 }
 0x678   :  { %1073 = vmatpush1.bf16.msra.mxu0 %v1614_v41  ;;  %1465 = vmatpush3.bf16.msra.mxu1 %v1817_v21  ;;  %v1620_v21 = vld [vmem:[#allocation6 + $0xa8] ss:$12 sps:$4 sm:$0xff]  }
 0x679   :  { %1074 = vmatprep.subr.bf16.mxu0 %v1615_v43  ;;  %1466 = vmatprep.subr.bf16.mxu1 %v1697_v0 }
 0x67c   :  { %1075 = vmatpush1.bf16.msra.mxu0 %v1616_v44  ;;  %1467 = vmatpush3.bf16.msra.mxu1 %v1827_v24  ;;  %v1243_v24 = vld [vmem:[%s2161_s1 + $0x38] sm:$0xff]  ;;  %s1701_s1 = smov [#allocation8]  }
 0x67d   :  { %1076 = vmatprep.subr.bf16.mxu0 %v1617_v45  ;;  %1468 = vmatprep.subr.bf16.mxu1 %v1697_v0  ;;  %s1183_s30 = sshll.u32 %s1701_s1, 4  ;;  %s1184_s30 = int_to_ptr.vmem [resolvable:$true] %s1183_s30 }
 0x67e   :  { %1171 = vperm.xlu1 %1488, %v1243_v24   ;;  %s1665_s5 = scalar_lea.vmem %s1184_s30, 1024  ;;  %p1670_p3 = scmp.lt.s32.totalorder %s1184_s30, %s1184_s30 }
 0x67f   :  { %p1666_p2 = scmp.ne.s32.totalorder %s1184_s30, %s1665_s5  ;;  %p1671_p4 = scmp.lt.s32.totalorder %s1665_s5, %s1665_s5 }
 0x680   :  { %1077 = vmatpush1.bf16.msra.mxu0 %v1618_v46  ;;  %1469 = vmatpush3.bf16.msra.mxu1 %v1833_v25 }
 0x681   :  { %1078 = vmatprep.subr.bf16.mxu0 %v1619_v49  ;;  %1470 = vmatprep.subr.bf16.mxu1 %v1697_v0  ;;  %p1672_p5 = por %p1671_p4, %p1670_p3 }
 0x683   :  { %p1673_p6 = pnand %p1672_p5, %p1666_p2 }
 0x684   :  { %1079 = vmatpush1.bf16.msra.mxu0 %v1620_v21  ;;  %1471 = vmatpush3.bf16.msra.mxu1 %v1838_v27 }
 0x73a   :  { %v978_v52 = vpop.f32.mrb[24].mxu0  ;;  %v1019_v53 = vpop.f32.mrb[24].mxu1 }
 0x73b   :  { %v1025_v3 = vadd.f32 %v978_v52, %v940_v51  ;;  %v980_v25 = vpop.f32.mrb[25].mxu0  ;;  %v1454_v4 = vpop.f32.mrb[25].mxu1  ;;  %v1039_v17 = vadd.f32 %v1884_v47, %v1019_v53 }
 0x73c   :  { %v982_v5 = vpop.f32.mrb[26].mxu0  ;;  %v1022_v6 = vpop.f32.mrb[26].mxu1  ;;  %v1032_v9 = vadd.f32 %v980_v25, %v941_v54 }
 0x73d   :  { %v1238_v0 = vmul.f32 -1.442695, %v1025_v3  ;;  %v983_v7 = vpop.f32.mrb[27].mxu0  ;;  %v1455_v8 = vpop.f32.mrb[27].mxu1 }
 0x73e   :  { %v1239_v27 = vmul.f32 -1.442695, %v1032_v9  ;;  %v1172_v51 = vpop.permute.xlu1 %1171 }
 0x73f   :  { %1581 = vpow2.f32 %v1238_v0 }
 0x740   :  { %1583 = vpow2.f32 %v1239_v27 }
 0x749   :  { %v1582_v10 = vpop.eup %1581 }
 0x74a   :  { %v1029_v11 = vadd.f32 1.0, %v1582_v10  ;;  %v1584_v12 = vpop.eup %1583 }
 0x74b   :  { %v1036_v14 = vadd.f32 1.0, %v1584_v12 }
 0x74c   :  { %1585 = vrcp.f32 %v1029_v11 }
 0x74d   :  { %1587 = vrcp.f32 %v1036_v14 }
 0x756   :  { %v1586_v18 = vpop.eup %1585 }
 0x757   :  { %v1040_v19 = vmul.f32 %v1586_v18, %v1039_v17  ;;  %v1588_v22 = vpop.eup %1587 }
 0x758   :  { %v1043_v23 = vsub.f32 1.0, %v1588_v22  ;;  %v1045_v42 = vmul.f32 %v1588_v22, %v2123_v28 }
 0x759   :  { %v1041_v20 = vadd.f32 %v1040_v19, %v942_v15 }
 0x75b   :  { %1589 = vtanh.f32 %v1041_v20 }
 0x765   :  { %v1590_v55 = vpop.eup %1589 }
 0x766   :  { %v1044_v56 = vmul.f32 %v1590_v55, %v1043_v23 }
 0x768   :  { %v1046_v58 = vadd.f32 %v1045_v42, %v1044_v56 }
 0x76a   :  { %v1054_v60 = vmul.f32 %v1052_v57, %v1046_v58  ;;  %v1063_v59 = vpack.c.bf16 %v1046_v58, %v1046_v58 }
 0x76c   :  { %1056 = vst [vmem:[#allocation8 + $0x30] sm:$0xff] %v1054_v60  ;;  %1097 = vmatmul.mubr.bf16.vlgmr.msra.gmra.mrb[28].mxu0 %v1063_v59  ;;  %1473 = vmatmul.mubr.bf16.vlgmr.msra.gmra.mrb[28].mxu1 %v1063_v59 }
 0x83f   :  { %v1098_v62 = vpop.f32.mrb[28].mxu0  ;;  %v1139_v63 = vpop.f32.mrb[28].mxu1 }
 0x840   :  { %v1145_v26 = vadd.f32 %v1098_v62, %v1060_v61  ;;  %v1100_v29 = vpop.f32.mrb[29].mxu0  ;;  %v1474_v30 = vpop.f32.mrb[29].mxu1  ;;  %v1159_v40 = vadd.f32 %v1884_v47, %v1139_v63 }
 0x841   :  { %v1102_v2 = vpop.f32.mrb[30].mxu0  ;;  %v1142_v31 = vpop.f32.mrb[30].mxu1  ;;  %v1152_v34 = vadd.f32 %v1100_v29, %v1061_v16 }
 0x842   :  { %v1241_v32 = vmul.f32 -1.442695, %v1145_v26  ;;  %v1103_v33 = vpop.f32.mrb[31].mxu0  ;;  %v1475_v28 = vpop.f32.mrb[31].mxu1 }
 0x843   :  { %v1242_v35 = vmul.f32 -1.442695, %v1152_v34 }
 0x844   :  { %1591 = vpow2.f32 %v1241_v32 }
 0x845   :  { %1593 = vpow2.f32 %v1242_v35 }
 0x84e   :  { %v1592_v36 = vpop.eup %1591 }
 0x84f   :  { %v1149_v37 = vadd.f32 1.0, %v1592_v36  ;;  %v1594_v38 = vpop.eup %1593 }
 0x850   :  { %v1156_v1 = vadd.f32 1.0, %v1594_v38 }
 0x851   :  { %1595 = vrcp.f32 %v1149_v37 }
 0x852   :  { %1597 = vrcp.f32 %v1156_v1 }
 0x85b   :  { %v1596_v41 = vpop.eup %1595 }
 0x85c   :  { %v1160_v43 = vmul.f32 %v1596_v41, %v1159_v40  ;;  %v1598_v45 = vpop.eup %1597 }
 0x85d   :  { %v1163_v46 = vsub.f32 1.0, %v1598_v45  ;;  %v1165_v24 = vmul.f32 %v1598_v45, %v1046_v58 }
 0x85e   :  { %v1161_v44 = vadd.f32 %v1160_v43, %v1062_v39 }
 0x860   :  { %1599 = vtanh.f32 %v1161_v44 }
 0x86a   :  { %v1600_v49 = vpop.eup %1599 }
 0x86b   :  { %v1164_v21 = vmul.f32 %v1600_v49, %v1163_v46 }
 0x86d   :  { %v1166_v50 = vadd.f32 %v1165_v24, %v1164_v21 }
 0x86f   :  { %v1174_v52 = vmul.f32 %v1172_v51, %v1166_v50 }
 0x871   :  { %1176 = vst [vmem:[#allocation8 + $0x38] sm:$0xff] %v1174_v52 }
 0x872   :  { %1676 = shalt.err (!%p1673_p6)
}
 0x873   :  { %s1677_s8 = scalar_lea.hbm %s2164_s4, 1024 }
 0x874   :  { %p1678_p7 = scmp.ne.s32.totalorder %s2164_s4, %s1677_s8  ;;  %p1681_p8 = scmp.lt.u32.totalorder %s1677_s8, %s2164_s4 }
 0x876   :  { %p1683_p9 = pnand %p1681_p8, %p1678_p7 }
 0x878   :  { %1686 = shalt.err (!%p1683_p9)
}
 0x879   :  { %s1702_s0 = smov 128   ;;  %s1703_s13 = smov 8  }
 0x87a   :  { %1189 = dma.vmem_to_hbm [thread:$0]  %s1184_s30, 1024, %s2164_s4, [#allocation5], %s1702_s0, %s1702_s0, %s1703_s13  }
 0x87b   :  { %1691 = dma.done.wait [#allocation5], 1024  }
 0x87c   :  { %1692 = vsyncadd [#allocation5], 4294966272 }
 0x87d   :  { %1193 = vsyncpa [#allocation4], 1 }
 0x87e   :  { %1194 = vsyncpa [#allocation7], 1 }
 0x87f   :  { %1195 = vsyncpa [#allocation5], 1 }

</bundles_post_ra>
